<compile_context>
chip_gen: v7x
topology: tpu7x:2x2x1
jax: 0.10.0
libtpu: 0.0.40
codegen_flags: <defaults>
</compile_context>

<pallas_src>
import jax
import jax.numpy as jnp
import numpy as np
from jax import lax
from jax.experimental import pallas as pl
from jax.experimental.pallas import tpu as pltpu

_LANES = 128      # TPU lane width: batch is padded to a multiple of this
_MAX_TT = 128     # max time-tile (steps per grid iteration)
_UNROLL = 8       # fori_loop unroll factor (divides every tile size we pick)


def _round_up(x, m):
    return ((x + m - 1) // m) * m


def _tree_max_argmax(cands):
    """Pairwise-tree (max, argmax) over a list of same-shaped arrays.

    Ties resolve to the lowest index (np.argmax semantics).  Depth is
    ceil(log2 C) instead of a (C-1)-long compare/select dependence chain.
    """
    items = [(v, jnp.int32(i)) for i, v in enumerate(cands)]
    while len(items) > 1:
        nxt = []
        for q in range(0, len(items) - 1, 2):
            va, ia = items[q]
            vb, ib = items[q + 1]
            take_b = vb > va                       # strict >: ties keep lower index
            nxt.append((jnp.where(take_b, vb, va), jnp.where(take_b, ib, ia)))
        if len(items) % 2:
            nxt.append(items[-1])
        items = nxt
    val, idx = items[0]
    idx = jnp.broadcast_to(idx, val.shape).astype(jnp.int32)
    return val, idx


def _viterbi_fused_kernel(feats_ref, mask_ref, trans_ref, lens_ref,
                          path_ref, best_ref, score_ref,
                          alpha_ref, bt_ref):
    """Fused Viterbi forward + backpointer chase for one 128-lane batch block.

    Per grid step (b = batch block, t = time tile):
      feats_ref : [Tt, C, Bb] f32   emission scores, batch on lanes (time-tiled)
      mask_ref  : [Tt, Bb]    i32   token mask (time-tiled)
      trans_ref : [C, C, 1]   f32   transitions[prev, cur] (resident)
      lens_ref  : [1, Bb]     i32   per-sequence lengths (resident)
      path_ref  : [Tp, Bb]    i32   decoded tags (resident output, written at last t)
      best_ref  : [1, Bb]     i32   best final tag
      score_ref : [1, Bb]     f32   logsumexp score over final states
      alpha_ref : [C, Bb]     f32   VMEM scratch, carried across the time grid
      bt_ref    : [Tp, C, Bb] i32   VMEM scratch, full backtrace for this batch block
    """
    Tt, C, B = feats_ref.shape
    Tp = path_ref.shape[0]
    START = C - 2           # torch START_TAG == -2
    STOP = C - 1            # torch STOP_TAG  == -1
    t_idx = pl.program_id(1)
    t_num = pl.num_programs(1)
    t_base = t_idx * Tt

    @pl.when(t_idx == 0)
    def _():
        row = lax.broadcasted_iota(jnp.int32, (C, B), 0)
        alpha_ref[...] = jnp.where(row == START, 0.0, -10000.0).astype(jnp.float32)

    trans = trans_ref[...]                                   # [C, C, 1]
    # Hoisted lane-broadcast of each transition row (JAX does not CSE
    # broadcast_in_dim; doing this inside the loop re-broadcasts C rows per step).
    trans_rows = [jnp.broadcast_to(trans[p], (C, B)) for p in range(C)]

    def step(lt, alpha):
        feat = feats_ref[lt]                                 # [C, B]
        m_t = mask_ref[pl.ds(lt, 1), :]                      # [1, B]
        # max/argmax over prev; feat added after the reduction (constant over prev).
        cands = [alpha[p:p + 1, :] + trans_rows[p] for p in range(C)]
        mx, bt = _tree_max_argmax(cands)                     # both [C, B]
        bt_ref[t_base + lt] = bt
        return jnp.where(m_t != 0, mx + feat, alpha)

    alpha = lax.fori_loop(0, Tt, step, alpha_ref[...], unroll=_UNROLL)
    alpha_ref[...] = alpha

    @pl.when(t_idx == t_num - 1)
    def _():
        # Final transition into STOP: best tag + logsumexp score over final states.
        s_rows = [alpha[p:p + 1, :] + trans_rows[p][STOP:STOP + 1, :]
                  for p in range(C)]                         # each [1, B]
        mxf, best = _tree_max_argmax(s_rows)
        best_ref[...] = best
        ssum = jnp.zeros_like(mxf)
        for s in s_rows:
            ssum = ssum + jnp.exp(s - mxf)
        score_ref[...] = mxf + jnp.log(ssum)

        # On-device backpointer chase over the VMEM-resident backtrace.
        lens = lens_ref[...]                                 # [1, B]
        iota_c = lax.broadcasted_iota(jnp.int32, (C, B), 0)

        def chase(i, cur):
            t = Tp - 1 - i
            path_ref[pl.ds(t, 1), :] = cur
            bt_row = bt_ref[t]                               # [C, B]
            g = jnp.sum(jnp.where(iota_c == cur, bt_row, 0),
                        axis=0, keepdims=True)               # bt_row[cur[b], b]
            follow = jnp.logical_and(t >= 1, t < lens)       # chase only inside seq
            return jnp.where(follow, g, cur)

        lax.fori_loop(0, Tp, chase, best, unroll=_UNROLL)


def viterbi_decode_batch_pallas(feats, mask, transitions, *,
                                max_tt=_MAX_TT, batch_block=_LANES):
    """feats: [B, T, C] f32, mask: [B, T] int, transitions: [C, C] f32.

    Returns (path [T_pad, B] i32, best_tag [1, B] i32, score [1, B] f32); only
    path[:len[b], b] is meaningful, the rest is padding.
    """
    B, T, C = feats.shape

    # ---- layout: batch on the 128-wide lane dimension -------------------------
    B_pad = _round_up(max(B, 1), batch_block)
    nb = B_pad // batch_block
    tt = min(max_tt, _round_up(T, _UNROLL))
    nt = -(-T // tt)                  # cdiv
    T_pad = nt * tt

    feats_k = jnp.transpose(feats.astype(jnp.float32), (1, 2, 0))   # [T, C, B]
    mask_i = mask.astype(jnp.int32)
    mask_k = jnp.transpose(mask_i, (1, 0))                          # [T, B]
    feats_k = jnp.pad(feats_k, ((0, T_pad - T), (0, 0), (0, B_pad - B)))
    mask_k = jnp.pad(mask_k, ((0, T_pad - T), (0, B_pad - B)))
    lens_k = jnp.pad(jnp.sum(mask_i, axis=1, dtype=jnp.int32),
                     (0, B_pad - B)).reshape(1, B_pad)              # [1, B_pad]
    trans_k = transitions.astype(jnp.float32)[:, :, None]           # [C, C, 1]

    # ---- VMEM budget (per core / per batch block) ------------------------------
    c_pad = _round_up(C, 8)
    vmem_need = (T_pad * c_pad * batch_block * 4           # resident backtrace scratch
                 + 2 * tt * (c_pad + 1) * batch_block * 4  # double-buffered feats+mask
                 + 2 * T_pad * batch_block * 4             # resident path output
                 + (2 << 20))                              # misc headroom
    if vmem_need > (48 << 20):
        # TODO(synk): two-kernel fallback with an int8 HBM backtrace for very long T.
        raise NotImplementedError("sequence too long for a VMEM-resident backtrace")
    vmem_limit = max(32 << 20, int(vmem_need))

    path, best, score = pl.pallas_call(
        _viterbi_fused_kernel,
        grid=(nb, nt),
        in_specs=[
            pl.BlockSpec((tt, C, batch_block), lambda b, t: (t, 0, b)),  # feats
            pl.BlockSpec((tt, batch_block), lambda b, t: (t, b)),        # mask
            pl.BlockSpec((C, C, 1), lambda b, t: (0, 0, 0)),             # transitions
            pl.BlockSpec((1, batch_block), lambda b, t: (0, b)),         # lengths
        ],
        out_specs=(
            pl.BlockSpec((T_pad, batch_block), lambda b, t: (0, b)),     # path
            pl.BlockSpec((1, batch_block), lambda b, t: (0, b)),         # best tag
            pl.BlockSpec((1, batch_block), lambda b, t: (0, b)),         # score
        ),
        out_shape=(
            jax.ShapeDtypeStruct((T_pad, B_pad), jnp.int32),
            jax.ShapeDtypeStruct((1, B_pad), jnp.int32),
            jax.ShapeDtypeStruct((1, B_pad), jnp.float32),
        ),
        scratch_shapes=[
            pltpu.VMEM((C, batch_block), jnp.float32),          # alpha (carried)
            pltpu.VMEM((T_pad, C, batch_block), jnp.int32),     # backtrace (carried)
        ],
        compiler_params=pltpu.CompilerParams(
            dimension_semantics=("parallel", "arbitrary"),
            vmem_limit_bytes=vmem_limit),
    )(feats_k, mask_k, trans_k, lens_k)

    return path[:, :B], best[:, :B], score[:, :B]


class CRFTaggerPallas:
    """JAX/Pallas re-implementation of CRFTagger.forward (use_crf=True)."""

    def __init__(self, worker_number, n_class, pi, scaling, key):
        self.n_class = n_class + 2          # includes START/STOP
        C = self.n_class
        self.worker_number = worker_number
        k1, k2 = jax.random.split(key)

        # transitions = randn(C, C); trans[:, START] = -1e5; trans[STOP, :] = -1e5
        trans = jax.random.normal(k1, (C, C), dtype=jnp.float32)
        trans = trans.at[:, C - 2].set(-100000.0)
        trans = trans.at[C - 1, :].set(-100000.0)
        self.transitions = trans

        # worker_transitions (kept for fidelity with CRF.__init__, unused in forward)
        wt = jax.random.normal(k2, (worker_number, C, C), dtype=jnp.float32)
        wt = wt.at[:, :n_class, :n_class].set(scaling * pi)
        wt = wt.at[:, :, C - 2].set(-10000.0)
        wt = wt.at[:, C - 1, :].set(-10000.0)
        wt = wt.at[:, C - 2, :].set(-10000.0)
        wt = wt.at[:, :, C - 1].set(-10000.0)
        self.worker_transitions = wt

    def forward(self, feats, mask):
        """feats: [B, T, C] emission scores, mask: [B, T] -> (scores, tag_seq)."""
        path, best, score = viterbi_decode_batch_pallas(feats, mask, self.transitions)
        lens = jnp.sum(mask.astype(jnp.int32), axis=1)
        # Single device->host transfer; numpy slicing instead of per-element .item().
        path_np, score_np, lens_np = jax.device_get((path, score, lens))
        best_paths = [path_np[:max(int(l), 1), b].tolist()
                      for b, l in enumerate(lens_np)]
        return score_np[0].tolist(), best_paths


def _reference_viterbi(feats, mask, transitions):
    """Pure-numpy reference mirroring torch CRF.viterbi_decode_batch."""
    feats = np.asarray(feats, np.float32)
    mask = np.asarray(mask).astype(bool)
    trans = np.asarray(transitions, np.float32)
    B, T, C = feats.shape
    START, STOP = C - 2, C - 1
    backtrace = np.zeros((B, T, C), np.int64)
    alpha = np.full((B, C), -10000.0, np.float32)
    alpha[:, START] = 0.0
    for i in range(T):
        smat = alpha[:, :, None] + feats[:, i, :][:, None, :] + trans[None, :, :]
        backtrace[:, i, :] = smat.argmax(1)
        alpha2 = smat.max(1)
        alpha = np.where(mask[:, i][:, None], alpha2, alpha)
    smat_f = alpha + trans[:, STOP][None, :]
    best = smat_f.argmax(1)
    m = smat_f.max(1, keepdims=True)
    lse = (m + np.log(np.exp(smat_f - m).sum(1, keepdims=True)))[:, 0]
    seq_len = mask.astype(np.int64).sum(1)
    paths = []
    for b in range(B):
        l = int(seq_len[b]); tag = int(best[b]); p = [tag]
        for t in range(l - 1, 0, -1):
            tag = int(backtrace[b, t, tag]); p.append(tag)
        paths.append(p[::-1])
    return lse.tolist(), paths


if __name__ == "__main__":
    key = jax.random.PRNGKey(0)
    k_feat1, k_feat2, k_feat3, k_pi, k_model = jax.random.split(key, 5)

    n_class = 5
    worker_number = 3
    C = n_class + 2

    pi = jax.random.uniform(k_pi, (worker_number, n_class, n_class), dtype=jnp.float32)
    model = CRFTaggerPallas(worker_number, n_class, pi, scaling=1.0, key=k_model)

    # TODO(synk): get_features is abstract in CRFTagger; emissions are synthesized here.

    # Case 1: B=2, T=8 (single time tile; batch padded 2 -> 128 lanes).
    B1, T1 = 2, 8
    feats1 = jax.random.normal(k_feat1, (B1, T1, C), dtype=jnp.float32)
    lens1 = [8, 5]
    mask1 = (jnp.arange(T1)[None, :] < jnp.array(lens1)[:, None]).astype(jnp.int32)
    out1 = viterbi_decode_batch_pallas(feats1, mask1, model.transitions)
    jax.block_until_ready(out1)
    scores1, tags1 = model.forward(feats1, mask1)
    ref_scores1, ref_paths1 = _reference_viterbi(feats1, mask1, model.transitions)
    assert tags1 == ref_paths1, (tags1, ref_paths1)
    assert np.allclose(np.array(scores1), np.array(ref_scores1), rtol=1e-5, atol=1e-5)

    # Case 2: T not a multiple of the tile (exercises time padding).
    B2, T2 = 2, 11
    feats2 = jax.random.normal(k_feat2, (B2, T2, C), dtype=jnp.float32)
    lens2 = [11, 7]
    mask2 = (jnp.arange(T2)[None, :] < jnp.array(lens2)[:, None]).astype(jnp.int32)
    scores2, tags2 = model.forward(feats2, mask2)
    ref_scores2, ref_paths2 = _reference_viterbi(feats2, mask2, model.transitions)
    assert tags2 == ref_paths2, (tags2, ref_paths2)
    assert np.allclose(np.array(scores2), np.array(ref_scores2), rtol=1e-5, atol=1e-5)

    # Case 3: multi-tile time grid (max_tt=8 -> 3 tiles) and two 128-lane batch
    # blocks (B=130 -> padded to 256), exercising the parallel batch axis and the
    # alpha/backtrace scratch carried across grid steps.
    B3, T3 = 130, 21
    feats3 = jax.random.normal(k_feat3, (B3, T3, C), dtype=jnp.float32)
    lens3 = [(7 * b) % T3 + 1 for b in range(B3)]
    mask3 = (jnp.arange(T3)[None, :] < jnp.array(lens3)[:, None]).astype(jnp.int32)
    path3, best3, score3 = viterbi_decode_batch_pallas(
        feats3, mask3, model.transitions, max_tt=8)
    jax.block_until_ready((path3, best3, score3))
    path3_np, score3_np = np.asarray(path3), np.asarray(score3)
    got_paths3 = [path3_np[:max(l, 1), b].tolist() for b, l in enumerate(lens3)]
    ref_scores3, ref_paths3 = _reference_viterbi(feats3, mask3, model.transitions)
    assert got_paths3 == ref_paths3
    assert np.allclose(score3_np[0], np.array(ref_scores3), rtol=1e-5, atol=1e-4)

    print("KERNEL_OK")
</pallas_src>

<mosaic_0001>
module attributes {stable_mosaic.version = 11 : i64} {
  func.func @_viterbi_fused_kernel(%arg0: i32, %arg1: i32, %arg2: memref<8x7x128xf32, #tpu.memory_space<vmem>>, %arg3: memref<8x128xi32, #tpu.memory_space<vmem>>, %arg4: memref<7x7x1xf32, #tpu.memory_space<vmem>>, %arg5: memref<1x128xi32, #tpu.memory_space<vmem>>, %arg6: memref<8x128xi32, #tpu.memory_space<vmem>>, %arg7: memref<1x128xi32, #tpu.memory_space<vmem>>, %arg8: memref<1x128xf32, #tpu.memory_space<vmem>>, %arg9: memref<7x128xf32, #tpu.memory_space<vmem>>, %arg10: memref<8x7x128xi32, #tpu.memory_space<vmem>>) attributes {dimension_semantics = [#tpu.dimension_semantics<parallel>, #tpu.dimension_semantics<arbitrary>], iteration_bounds = array<i64: 1, 1>, scalar_prefetch = 0 : i64, scratch_operands = 2 : i64, tpu.core_type = #tpu.core_type<tc>, window_params = [{transform_indices = @transform_0, window_bounds = array<i64: 8, 7, 128>}, {transform_indices = @transform_1, window_bounds = array<i64: 8, 128>}, {pipeline_mode = #tpu.pipeline_mode<synchronous>, transform_indices = @transform_2, window_bounds = array<i64: 7, 7, 1>}, {transform_indices = @transform_3, window_bounds = array<i64: 1, 128>}, {transform_indices = @transform_4, window_bounds = array<i64: 8, 128>}, {transform_indices = @transform_5, window_bounds = array<i64: 1, 128>}, {transform_indices = @transform_6, window_bounds = array<i64: 1, 128>}]} {
    %c8_i32 = arith.constant 8 : i32
    %0 = arith.muli %arg1, %c8_i32 : i32
    %c0_i32 = arith.constant 0 : i32
    %1 = arith.cmpi eq, %arg1, %c0_i32 : i32
    %2 = arith.extui %1 : i1 to i32
    %c0_i32_0 = arith.constant 0 : i32
    %3 = arith.cmpi ne, %2, %c0_i32_0 : i32
    scf.if %3 {
      %534 = tpu.iota {dimensions = array<i32: 0>} : vector<7x128xi32>
      %c5_i32_115 = arith.constant 5 : i32
      %535 = vector.broadcast %c5_i32_115 : i32 to vector<7x128xi32>
      %536 = arith.cmpi eq, %534, %535 : vector<7x128xi32>
      %cst = arith.constant 0.000000e+00 : f32
      %cst_116 = arith.constant -1.000000e+04 : f32
      %537 = vector.broadcast %cst : f32 to vector<7x128xf32>
      %538 = vector.broadcast %cst_116 : f32 to vector<7x128xf32>
      %539 = arith.select %536, %537, %538 : vector<7x128xi1>, vector<7x128xf32>
      %c0_117 = arith.constant 0 : index
      %c0_118 = arith.constant 0 : index
      %540 = vector.load %arg9[%c0_117, %c0_118] : memref<7x128xf32, #tpu.memory_space<vmem>>, vector<7x128xf32>
      tpu.vector_store %arg9[%c0_117, %c0_118], %539 {strides = array<i32>} : memref<7x128xf32, #tpu.memory_space<vmem>>, vector<7x128xf32>,
    } else {
    }
    %c0 = arith.constant 0 : index
    %c0_1 = arith.constant 0 : index
    %c0_2 = arith.constant 0 : index
    %4 = vector.load %arg4[%c0, %c0_1, %c0_2] : memref<7x7x1xf32, #tpu.memory_space<vmem>>, vector<7x7x1xf32>
    %5 = vector.extract_strided_slice %4 {offsets = [0, 0, 0], sizes = [1, 7, 1], strides = [1, 1, 1]} : vector<7x7x1xf32> to vector<1x7x1xf32>
    %6 = vector.shape_cast %5 : vector<1x7x1xf32> to vector<7x1xf32>
    %7 = vector.shape_cast %6 : vector<7x1xf32> to vector<7x1xf32>
    %8 = vector.broadcast %7 : vector<7x1xf32> to vector<7x128xf32>
    %9 = vector.extract_strided_slice %4 {offsets = [1, 0, 0], sizes = [1, 7, 1], strides = [1, 1, 1]} : vector<7x7x1xf32> to vector<1x7x1xf32>
    %10 = vector.shape_cast %9 : vector<1x7x1xf32> to vector<7x1xf32>
    %11 = vector.shape_cast %10 : vector<7x1xf32> to vector<7x1xf32>
    %12 = vector.broadcast %11 : vector<7x1xf32> to vector<7x128xf32>
    %13 = vector.extract_strided_slice %4 {offsets = [2, 0, 0], sizes = [1, 7, 1], strides = [1, 1, 1]} : vector<7x7x1xf32> to vector<1x7x1xf32>
    %14 = vector.shape_cast %13 : vector<1x7x1xf32> to vector<7x1xf32>
    %15 = vector.shape_cast %14 : vector<7x1xf32> to vector<7x1xf32>
    %16 = vector.broadcast %15 : vector<7x1xf32> to vector<7x128xf32>
    %17 = vector.extract_strided_slice %4 {offsets = [3, 0, 0], sizes = [1, 7, 1], strides = [1, 1, 1]} : vector<7x7x1xf32> to vector<1x7x1xf32>
    %18 = vector.shape_cast %17 : vector<1x7x1xf32> to vector<7x1xf32>
    %19 = vector.shape_cast %18 : vector<7x1xf32> to vector<7x1xf32>
    %20 = vector.broadcast %19 : vector<7x1xf32> to vector<7x128xf32>
    %21 = vector.extract_strided_slice %4 {offsets = [4, 0, 0], sizes = [1, 7, 1], strides = [1, 1, 1]} : vector<7x7x1xf32> to vector<1x7x1xf32>
    %22 = vector.shape_cast %21 : vector<1x7x1xf32> to vector<7x1xf32>
    %23 = vector.shape_cast %22 : vector<7x1xf32> to vector<7x1xf32>
    %24 = vector.broadcast %23 : vector<7x1xf32> to vector<7x128xf32>
    %25 = vector.extract_strided_slice %4 {offsets = [5, 0, 0], sizes = [1, 7, 1], strides = [1, 1, 1]} : vector<7x7x1xf32> to vector<1x7x1xf32>
    %26 = vector.shape_cast %25 : vector<1x7x1xf32> to vector<7x1xf32>
    %27 = vector.shape_cast %26 : vector<7x1xf32> to vector<7x1xf32>
    %28 = vector.broadcast %27 : vector<7x1xf32> to vector<7x128xf32>
    %29 = vector.extract_strided_slice %4 {offsets = [6, 0, 0], sizes = [1, 7, 1], strides = [1, 1, 1]} : vector<7x7x1xf32> to vector<1x7x1xf32>
    %30 = vector.shape_cast %29 : vector<1x7x1xf32> to vector<7x1xf32>
    %31 = vector.shape_cast %30 : vector<7x1xf32> to vector<7x1xf32>
    %32 = vector.broadcast %31 : vector<7x1xf32> to vector<7x128xf32>
    %c0_3 = arith.constant 0 : index
    %c0_4 = arith.constant 0 : index
    %33 = vector.load %arg9[%c0_3, %c0_4] : memref<7x128xf32, #tpu.memory_space<vmem>>, vector<7x128xf32>
    %c0_i32_5 = arith.constant 0 : i32
    %34 = arith.index_cast %c0_i32_5 : i32 to index
    %c0_6 = arith.constant 0 : index
    %c0_7 = arith.constant 0 : index
    %35 = vector.load %arg2[%34, %c0_6, %c0_7] : memref<8x7x128xf32, #tpu.memory_space<vmem>>, vector<1x7x128xf32>
    %36 = vector.shape_cast %35 : vector<1x7x128xf32> to vector<7x128xf32>
    %37 = arith.index_cast %c0_i32_5 : i32 to index
    %c0_8 = arith.constant 0 : index
    %38 = vector.load %arg3[%37, %c0_8] : memref<8x128xi32, #tpu.memory_space<vmem>>, vector<1x128xi32>
    %39 = vector.extract_strided_slice %33 {offsets = [0, 0], sizes = [1, 128], strides = [1, 1]} : vector<7x128xf32> to vector<1x128xf32>
    %40 = vector.broadcast %39 : vector<1x128xf32> to vector<7x128xf32>
    %41 = arith.addf %40, %8 : vector<7x128xf32>
    %42 = vector.extract_strided_slice %33 {offsets = [1, 0], sizes = [1, 128], strides = [1, 1]} : vector<7x128xf32> to vector<1x128xf32>
    %43 = vector.broadcast %42 : vector<1x128xf32> to vector<7x128xf32>
    %44 = arith.addf %43, %12 : vector<7x128xf32>
    %45 = vector.extract_strided_slice %33 {offsets = [2, 0], sizes = [1, 128], strides = [1, 1]} : vector<7x128xf32> to vector<1x128xf32>
    %46 = vector.broadcast %45 : vector<1x128xf32> to vector<7x128xf32>
    %47 = arith.addf %46, %16 : vector<7x128xf32>
    %48 = vector.extract_strided_slice %33 {offsets = [3, 0], sizes = [1, 128], strides = [1, 1]} : vector<7x128xf32> to vector<1x128xf32>
    %49 = vector.broadcast %48 : vector<1x128xf32> to vector<7x128xf32>
    %50 = arith.addf %49, %20 : vector<7x128xf32>
    %51 = vector.extract_strided_slice %33 {offsets = [4, 0], sizes = [1, 128], strides = [1, 1]} : vector<7x128xf32> to vector<1x128xf32>
    %52 = vector.broadcast %51 : vector<1x128xf32> to vector<7x128xf32>
    %53 = arith.addf %52, %24 : vector<7x128xf32>
    %54 = vector.extract_strided_slice %33 {offsets = [5, 0], sizes = [1, 128], strides = [1, 1]} : vector<7x128xf32> to vector<1x128xf32>
    %55 = vector.broadcast %54 : vector<1x128xf32> to vector<7x128xf32>
    %56 = arith.addf %55, %28 : vector<7x128xf32>
    %57 = vector.extract_strided_slice %33 {offsets = [6, 0], sizes = [1, 128], strides = [1, 1]} : vector<7x128xf32> to vector<1x128xf32>
    %58 = vector.broadcast %57 : vector<1x128xf32> to vector<7x128xf32>
    %59 = arith.addf %58, %32 : vector<7x128xf32>
    %60 = arith.cmpf ogt, %44, %41 : vector<7x128xf32>
    %61 = arith.select %60, %44, %41 : vector<7x128xi1>, vector<7x128xf32>
    %c1_i32 = arith.constant 1 : i32
    %c0_i32_9 = arith.constant 0 : i32
    %62 = vector.broadcast %c1_i32 : i32 to vector<7x128xi32>
    %63 = vector.broadcast %c0_i32_9 : i32 to vector<7x128xi32>
    %64 = arith.select %60, %62, %63 : vector<7x128xi1>, vector<7x128xi32>
    %65 = arith.cmpf ogt, %50, %47 : vector<7x128xf32>
    %66 = arith.select %65, %50, %47 : vector<7x128xi1>, vector<7x128xf32>
    %c3_i32 = arith.constant 3 : i32
    %c2_i32 = arith.constant 2 : i32
    %67 = vector.broadcast %c3_i32 : i32 to vector<7x128xi32>
    %68 = vector.broadcast %c2_i32 : i32 to vector<7x128xi32>
    %69 = arith.select %65, %67, %68 : vector<7x128xi1>, vector<7x128xi32>
    %70 = arith.cmpf ogt, %56, %53 : vector<7x128xf32>
    %71 = arith.select %70, %56, %53 : vector<7x128xi1>, vector<7x128xf32>
    %c5_i32 = arith.constant 5 : i32
    %c4_i32 = arith.constant 4 : i32
    %72 = vector.broadcast %c5_i32 : i32 to vector<7x128xi32>
    %73 = vector.broadcast %c4_i32 : i32 to vector<7x128xi32>
    %74 = arith.select %70, %72, %73 : vector<7x128xi1>, vector<7x128xi32>
    %75 = arith.cmpf ogt, %66, %61 : vector<7x128xf32>
    %76 = arith.select %75, %66, %61 : vector<7x128xi1>, vector<7x128xf32>
    %77 = arith.select %75, %69, %64 : vector<7x128xi1>, vector<7x128xi32>
    %78 = arith.cmpf ogt, %59, %71 : vector<7x128xf32>
    %79 = arith.select %78, %59, %71 : vector<7x128xi1>, vector<7x128xf32>
    %c6_i32 = arith.constant 6 : i32
    %80 = vector.broadcast %c6_i32 : i32 to vector<7x128xi32>
    %81 = arith.select %78, %80, %74 : vector<7x128xi1>, vector<7x128xi32>
    %82 = arith.cmpf ogt, %79, %76 : vector<7x128xf32>
    %83 = arith.select %82, %79, %76 : vector<7x128xi1>, vector<7x128xf32>
    %84 = arith.select %82, %81, %77 : vector<7x128xi1>, vector<7x128xi32>
    %85 = arith.addi %0, %c0_i32_5 : i32
    %86 = arith.index_cast %85 : i32 to index
    %c0_10 = arith.constant 0 : index
    %c0_11 = arith.constant 0 : index
    %87 = vector.load %arg10[%86, %c0_10, %c0_11] : memref<8x7x128xi32, #tpu.memory_space<vmem>>, vector<1x7x128xi32>
    %88 = vector.shape_cast %87 : vector<1x7x128xi32> to vector<7x128xi32>
    %89 = vector.shape_cast %84 : vector<7x128xi32> to vector<1x7x128xi32>
    tpu.vector_store %arg10[%86, %c0_10, %c0_11], %89 {strides = array<i32>} : memref<8x7x128xi32, #tpu.memory_space<vmem>>, vector<1x7x128xi32>,
    %c0_i32_12 = arith.constant 0 : i32
    %90 = vector.broadcast %c0_i32_12 : i32 to vector<1x128xi32>
    %91 = arith.cmpi ne, %38, %90 : vector<1x128xi32>
    %92 = arith.addf %83, %36 : vector<7x128xf32>
    %93 = vector.shape_cast %91 : vector<1x128xi1> to vector<1x128xi1>
    %94 = vector.broadcast %93 : vector<1x128xi1> to vector<7x128xi1>
    %95 = arith.select %94, %92, %33 : vector<7x128xi1>, vector<7x128xf32>
    %c1_i32_13 = arith.constant 1 : i32
    %96 = arith.index_cast %c1_i32_13 : i32 to index
    %c0_14 = arith.constant 0 : index
    %c0_15 = arith.constant 0 : index
    %97 = vector.load %arg2[%96, %c0_14, %c0_15] : memref<8x7x128xf32, #tpu.memory_space<vmem>>, vector<1x7x128xf32>
    %98 = vector.shape_cast %97 : vector<1x7x128xf32> to vector<7x128xf32>
    %99 = arith.index_cast %c1_i32_13 : i32 to index
    %c0_16 = arith.constant 0 : index
    %100 = vector.load %arg3[%99, %c0_16] : memref<8x128xi32, #tpu.memory_space<vmem>>, vector<1x128xi32>
    %101 = vector.extract_strided_slice %95 {offsets = [0, 0], sizes = [1, 128], strides = [1, 1]} : vector<7x128xf32> to vector<1x128xf32>
    %102 = vector.broadcast %101 : vector<1x128xf32> to vector<7x128xf32>
    %103 = arith.addf %102, %8 : vector<7x128xf32>
    %104 = vector.extract_strided_slice %95 {offsets = [1, 0], sizes = [1, 128], strides = [1, 1]} : vector<7x128xf32> to vector<1x128xf32>
    %105 = vector.broadcast %104 : vector<1x128xf32> to vector<7x128xf32>
    %106 = arith.addf %105, %12 : vector<7x128xf32>
    %107 = vector.extract_strided_slice %95 {offsets = [2, 0], sizes = [1, 128], strides = [1, 1]} : vector<7x128xf32> to vector<1x128xf32>
    %108 = vector.broadcast %107 : vector<1x128xf32> to vector<7x128xf32>
    %109 = arith.addf %108, %16 : vector<7x128xf32>
    %110 = vector.extract_strided_slice %95 {offsets = [3, 0], sizes = [1, 128], strides = [1, 1]} : vector<7x128xf32> to vector<1x128xf32>
    %111 = vector.broadcast %110 : vector<1x128xf32> to vector<7x128xf32>
    %112 = arith.addf %111, %20 : vector<7x128xf32>
    %113 = vector.extract_strided_slice %95 {offsets = [4, 0], sizes = [1, 128], strides = [1, 1]} : vector<7x128xf32> to vector<1x128xf32>
    %114 = vector.broadcast %113 : vector<1x128xf32> to vector<7x128xf32>
    %115 = arith.addf %114, %24 : vector<7x128xf32>
    %116 = vector.extract_strided_slice %95 {offsets = [5, 0], sizes = [1, 128], strides = [1, 1]} : vector<7x128xf32> to vector<1x128xf32>
    %117 = vector.broadcast %116 : vector<1x128xf32> to vector<7x128xf32>
    %118 = arith.addf %117, %28 : vector<7x128xf32>
    %119 = vector.extract_strided_slice %95 {offsets = [6, 0], sizes = [1, 128], strides = [1, 1]} : vector<7x128xf32> to vector<1x128xf32>
    %120 = vector.broadcast %119 : vector<1x128xf32> to vector<7x128xf32>
    %121 = arith.addf %120, %32 : vector<7x128xf32>
    %122 = arith.cmpf ogt, %106, %103 : vector<7x128xf32>
    %123 = arith.select %122, %106, %103 : vector<7x128xi1>, vector<7x128xf32>
    %c1_i32_17 = arith.constant 1 : i32
    %c0_i32_18 = arith.constant 0 : i32
    %124 = vector.broadcast %c1_i32_17 : i32 to vector<7x128xi32>
    %125 = vector.broadcast %c0_i32_18 : i32 to vector<7x128xi32>
    %126 = arith.select %122, %124, %125 : vector<7x128xi1>, vector<7x128xi32>
    %127 = arith.cmpf ogt, %112, %109 : vector<7x128xf32>
    %128 = arith.select %127, %112, %109 : vector<7x128xi1>, vector<7x128xf32>
    %c3_i32_19 = arith.constant 3 : i32
    %c2_i32_20 = arith.constant 2 : i32
    %129 = vector.broadcast %c3_i32_19 : i32 to vector<7x128xi32>
    %130 = vector.broadcast %c2_i32_20 : i32 to vector<7x128xi32>
    %131 = arith.select %127, %129, %130 : vector<7x128xi1>, vector<7x128xi32>
    %132 = arith.cmpf ogt, %118, %115 : vector<7x128xf32>
    %133 = arith.select %132, %118, %115 : vector<7x128xi1>, vector<7x128xf32>
    %c5_i32_21 = arith.constant 5 : i32
    %c4_i32_22 = arith.constant 4 : i32
    %134 = vector.broadcast %c5_i32_21 : i32 to vector<7x128xi32>
    %135 = vector.broadcast %c4_i32_22 : i32 to vector<7x128xi32>
    %136 = arith.select %132, %134, %135 : vector<7x128xi1>, vector<7x128xi32>
    %137 = arith.cmpf ogt, %128, %123 : vector<7x128xf32>
    %138 = arith.select %137, %128, %123 : vector<7x128xi1>, vector<7x128xf32>
    %139 = arith.select %137, %131, %126 : vector<7x128xi1>, vector<7x128xi32>
    %140 = arith.cmpf ogt, %121, %133 : vector<7x128xf32>
    %141 = arith.select %140, %121, %133 : vector<7x128xi1>, vector<7x128xf32>
    %c6_i32_23 = arith.constant 6 : i32
    %142 = vector.broadcast %c6_i32_23 : i32 to vector<7x128xi32>
    %143 = arith.select %140, %142, %136 : vector<7x128xi1>, vector<7x128xi32>
    %144 = arith.cmpf ogt, %141, %138 : vector<7x128xf32>
    %145 = arith.select %144, %141, %138 : vector<7x128xi1>, vector<7x128xf32>
    %146 = arith.select %144, %143, %139 : vector<7x128xi1>, vector<7x128xi32>
    %147 = arith.addi %0, %c1_i32_13 : i32
    %148 = arith.index_cast %147 : i32 to index
    %c0_24 = arith.constant 0 : index
    %c0_25 = arith.constant 0 : index
    %149 = vector.load %arg10[%148, %c0_24, %c0_25] : memref<8x7x128xi32, #tpu.memory_space<vmem>>, vector<1x7x128xi32>
    %150 = vector.shape_cast %149 : vector<1x7x128xi32> to vector<7x128xi32>
    %151 = vector.shape_cast %146 : vector<7x128xi32> to vector<1x7x128xi32>
    tpu.vector_store %arg10[%148, %c0_24, %c0_25], %151 {strides = array<i32>} : memref<8x7x128xi32, #tpu.memory_space<vmem>>, vector<1x7x128xi32>,
    %c0_i32_26 = arith.constant 0 : i32
    %152 = vector.broadcast %c0_i32_26 : i32 to vector<1x128xi32>
    %153 = arith.cmpi ne, %100, %152 : vector<1x128xi32>
    %154 = arith.addf %145, %98 : vector<7x128xf32>
    %155 = vector.shape_cast %153 : vector<1x128xi1> to vector<1x128xi1>
    %156 = vector.broadcast %155 : vector<1x128xi1> to vector<7x128xi1>
    %157 = arith.select %156, %154, %95 : vector<7x128xi1>, vector<7x128xf32>
    %c2_i32_27 = arith.constant 2 : i32
    %158 = arith.index_cast %c2_i32_27 : i32 to index
    %c0_28 = arith.constant 0 : index
    %c0_29 = arith.constant 0 : index
    %159 = vector.load %arg2[%158, %c0_28, %c0_29] : memref<8x7x128xf32, #tpu.memory_space<vmem>>, vector<1x7x128xf32>
    %160 = vector.shape_cast %159 : vector<1x7x128xf32> to vector<7x128xf32>
    %161 = arith.index_cast %c2_i32_27 : i32 to index
    %c0_30 = arith.constant 0 : index
    %162 = vector.load %arg3[%161, %c0_30] : memref<8x128xi32, #tpu.memory_space<vmem>>, vector<1x128xi32>
    %163 = vector.extract_strided_slice %157 {offsets = [0, 0], sizes = [1, 128], strides = [1, 1]} : vector<7x128xf32> to vector<1x128xf32>
    %164 = vector.broadcast %163 : vector<1x128xf32> to vector<7x128xf32>
    %165 = arith.addf %164, %8 : vector<7x128xf32>
    %166 = vector.extract_strided_slice %157 {offsets = [1, 0], sizes = [1, 128], strides = [1, 1]} : vector<7x128xf32> to vector<1x128xf32>
    %167 = vector.broadcast %166 : vector<1x128xf32> to vector<7x128xf32>
    %168 = arith.addf %167, %12 : vector<7x128xf32>
    %169 = vector.extract_strided_slice %157 {offsets = [2, 0], sizes = [1, 128], strides = [1, 1]} : vector<7x128xf32> to vector<1x128xf32>
    %170 = vector.broadcast %169 : vector<1x128xf32> to vector<7x128xf32>
    %171 = arith.addf %170, %16 : vector<7x128xf32>
    %172 = vector.extract_strided_slice %157 {offsets = [3, 0], sizes = [1, 128], strides = [1, 1]} : vector<7x128xf32> to vector<1x128xf32>
    %173 = vector.broadcast %172 : vector<1x128xf32> to vector<7x128xf32>
    %174 = arith.addf %173, %20 : vector<7x128xf32>
    %175 = vector.extract_strided_slice %157 {offsets = [4, 0], sizes = [1, 128], strides = [1, 1]} : vector<7x128xf32> to vector<1x128xf32>
    %176 = vector.broadcast %175 : vector<1x128xf32> to vector<7x128xf32>
    %177 = arith.addf %176, %24 : vector<7x128xf32>
    %178 = vector.extract_strided_slice %157 {offsets = [5, 0], sizes = [1, 128], strides = [1, 1]} : vector<7x128xf32> to vector<1x128xf32>
    %179 = vector.broadcast %178 : vector<1x128xf32> to vector<7x128xf32>
    %180 = arith.addf %179, %28 : vector<7x128xf32>
    %181 = vector.extract_strided_slice %157 {offsets = [6, 0], sizes = [1, 128], strides = [1, 1]} : vector<7x128xf32> to vector<1x128xf32>
    %182 = vector.broadcast %181 : vector<1x128xf32> to vector<7x128xf32>
    %183 = arith.addf %182, %32 : vector<7x128xf32>
    %184 = arith.cmpf ogt, %168, %165 : vector<7x128xf32>
    %185 = arith.select %184, %168, %165 : vector<7x128xi1>, vector<7x128xf32>
    %c1_i32_31 = arith.constant 1 : i32
    %c0_i32_32 = arith.constant 0 : i32
    %186 = vector.broadcast %c1_i32_31 : i32 to vector<7x128xi32>
    %187 = vector.broadcast %c0_i32_32 : i32 to vector<7x128xi32>
    %188 = arith.select %184, %186, %187 : vector<7x128xi1>, vector<7x128xi32>
    %189 = arith.cmpf ogt, %174, %171 : vector<7x128xf32>
    %190 = arith.select %189, %174, %171 : vector<7x128xi1>, vector<7x128xf32>
    %c3_i32_33 = arith.constant 3 : i32
    %c2_i32_34 = arith.constant 2 : i32
    %191 = vector.broadcast %c3_i32_33 : i32 to vector<7x128xi32>
    %192 = vector.broadcast %c2_i32_34 : i32 to vector<7x128xi32>
    %193 = arith.select %189, %191, %192 : vector<7x128xi1>, vector<7x128xi32>
    %194 = arith.cmpf ogt, %180, %177 : vector<7x128xf32>
    %195 = arith.select %194, %180, %177 : vector<7x128xi1>, vector<7x128xf32>
    %c5_i32_35 = arith.constant 5 : i32
    %c4_i32_36 = arith.constant 4 : i32
    %196 = vector.broadcast %c5_i32_35 : i32 to vector<7x128xi32>
    %197 = vector.broadcast %c4_i32_36 : i32 to vector<7x128xi32>
    %198 = arith.select %194, %196, %197 : vector<7x128xi1>, vector<7x128xi32>
    %199 = arith.cmpf ogt, %190, %185 : vector<7x128xf32>
    %200 = arith.select %199, %190, %185 : vector<7x128xi1>, vector<7x128xf32>
    %201 = arith.select %199, %193, %188 : vector<7x128xi1>, vector<7x128xi32>
    %202 = arith.cmpf ogt, %183, %195 : vector<7x128xf32>
    %203 = arith.select %202, %183, %195 : vector<7x128xi1>, vector<7x128xf32>
    %c6_i32_37 = arith.constant 6 : i32
    %204 = vector.broadcast %c6_i32_37 : i32 to vector<7x128xi32>
    %205 = arith.select %202, %204, %198 : vector<7x128xi1>, vector<7x128xi32>
    %206 = arith.cmpf ogt, %203, %200 : vector<7x128xf32>
    %207 = arith.select %206, %203, %200 : vector<7x128xi1>, vector<7x128xf32>
    %208 = arith.select %206, %205, %201 : vector<7x128xi1>, vector<7x128xi32>
    %209 = arith.addi %0, %c2_i32_27 : i32
    %210 = arith.index_cast %209 : i32 to index
    %c0_38 = arith.constant 0 : index
    %c0_39 = arith.constant 0 : index
    %211 = vector.load %arg10[%210, %c0_38, %c0_39] : memref<8x7x128xi32, #tpu.memory_space<vmem>>, vector<1x7x128xi32>
    %212 = vector.shape_cast %211 : vector<1x7x128xi32> to vector<7x128xi32>
    %213 = vector.shape_cast %208 : vector<7x128xi32> to vector<1x7x128xi32>
    tpu.vector_store %arg10[%210, %c0_38, %c0_39], %213 {strides = array<i32>} : memref<8x7x128xi32, #tpu.memory_space<vmem>>, vector<1x7x128xi32>,
    %c0_i32_40 = arith.constant 0 : i32
    %214 = vector.broadcast %c0_i32_40 : i32 to vector<1x128xi32>
    %215 = arith.cmpi ne, %162, %214 : vector<1x128xi32>
    %216 = arith.addf %207, %160 : vector<7x128xf32>
    %217 = vector.shape_cast %215 : vector<1x128xi1> to vector<1x128xi1>
    %218 = vector.broadcast %217 : vector<1x128xi1> to vector<7x128xi1>
    %219 = arith.select %218, %216, %157 : vector<7x128xi1>, vector<7x128xf32>
    %c3_i32_41 = arith.constant 3 : i32
    %220 = arith.index_cast %c3_i32_41 : i32 to index
    %c0_42 = arith.constant 0 : index
    %c0_43 = arith.constant 0 : index
    %221 = vector.load %arg2[%220, %c0_42, %c0_43] : memref<8x7x128xf32, #tpu.memory_space<vmem>>, vector<1x7x128xf32>
    %222 = vector.shape_cast %221 : vector<1x7x128xf32> to vector<7x128xf32>
    %223 = arith.index_cast %c3_i32_41 : i32 to index
    %c0_44 = arith.constant 0 : index
    %224 = vector.load %arg3[%223, %c0_44] : memref<8x128xi32, #tpu.memory_space<vmem>>, vector<1x128xi32>
    %225 = vector.extract_strided_slice %219 {offsets = [0, 0], sizes = [1, 128], strides = [1, 1]} : vector<7x128xf32> to vector<1x128xf32>
    %226 = vector.broadcast %225 : vector<1x128xf32> to vector<7x128xf32>
    %227 = arith.addf %226, %8 : vector<7x128xf32>
    %228 = vector.extract_strided_slice %219 {offsets = [1, 0], sizes = [1, 128], strides = [1, 1]} : vector<7x128xf32> to vector<1x128xf32>
    %229 = vector.broadcast %228 : vector<1x128xf32> to vector<7x128xf32>
    %230 = arith.addf %229, %12 : vector<7x128xf32>
    %231 = vector.extract_strided_slice %219 {offsets = [2, 0], sizes = [1, 128], strides = [1, 1]} : vector<7x128xf32> to vector<1x128xf32>
    %232 = vector.broadcast %231 : vector<1x128xf32> to vector<7x128xf32>
    %233 = arith.addf %232, %16 : vector<7x128xf32>
    %234 = vector.extract_strided_slice %219 {offsets = [3, 0], sizes = [1, 128], strides = [1, 1]} : vector<7x128xf32> to vector<1x128xf32>
    %235 = vector.broadcast %234 : vector<1x128xf32> to vector<7x128xf32>
    %236 = arith.addf %235, %20 : vector<7x128xf32>
    %237 = vector.extract_strided_slice %219 {offsets = [4, 0], sizes = [1, 128], strides = [1, 1]} : vector<7x128xf32> to vector<1x128xf32>
    %238 = vector.broadcast %237 : vector<1x128xf32> to vector<7x128xf32>
    %239 = arith.addf %238, %24 : vector<7x128xf32>
    %240 = vector.extract_strided_slice %219 {offsets = [5, 0], sizes = [1, 128], strides = [1, 1]} : vector<7x128xf32> to vector<1x128xf32>
    %241 = vector.broadcast %240 : vector<1x128xf32> to vector<7x128xf32>
    %242 = arith.addf %241, %28 : vector<7x128xf32>
    %243 = vector.extract_strided_slice %219 {offsets = [6, 0], sizes = [1, 128], strides = [1, 1]} : vector<7x128xf32> to vector<1x128xf32>
    %244 = vector.broadcast %243 : vector<1x128xf32> to vector<7x128xf32>
    %245 = arith.addf %244, %32 : vector<7x128xf32>
    %246 = arith.cmpf ogt, %230, %227 : vector<7x128xf32>
    %247 = arith.select %246, %230, %227 : vector<7x128xi1>, vector<7x128xf32>
    %c1_i32_45 = arith.constant 1 : i32
    %c0_i32_46 = arith.constant 0 : i32
    %248 = vector.broadcast %c1_i32_45 : i32 to vector<7x128xi32>
    %249 = vector.broadcast %c0_i32_46 : i32 to vector<7x128xi32>
    %250 = arith.select %246, %248, %249 : vector<7x128xi1>, vector<7x128xi32>
    %251 = arith.cmpf ogt, %236, %233 : vector<7x128xf32>
    %252 = arith.select %251, %236, %233 : vector<7x128xi1>, vector<7x128xf32>
    %c3_i32_47 = arith.constant 3 : i32
    %c2_i32_48 = arith.constant 2 : i32
    %253 = vector.broadcast %c3_i32_47 : i32 to vector<7x128xi32>
    %254 = vector.broadcast %c2_i32_48 : i32 to vector<7x128xi32>
    %255 = arith.select %251, %253, %254 : vector<7x128xi1>, vector<7x128xi32>
    %256 = arith.cmpf ogt, %242, %239 : vector<7x128xf32>
    %257 = arith.select %256, %242, %239 : vector<7x128xi1>, vector<7x128xf32>
    %c5_i32_49 = arith.constant 5 : i32
    %c4_i32_50 = arith.constant 4 : i32
    %258 = vector.broadcast %c5_i32_49 : i32 to vector<7x128xi32>
    %259 = vector.broadcast %c4_i32_50 : i32 to vector<7x128xi32>
    %260 = arith.select %256, %258, %259 : vector<7x128xi1>, vector<7x128xi32>
    %261 = arith.cmpf ogt, %252, %247 : vector<7x128xf32>
    %262 = arith.select %261, %252, %247 : vector<7x128xi1>, vector<7x128xf32>
    %263 = arith.select %261, %255, %250 : vector<7x128xi1>, vector<7x128xi32>
    %264 = arith.cmpf ogt, %245, %257 : vector<7x128xf32>
    %265 = arith.select %264, %245, %257 : vector<7x128xi1>, vector<7x128xf32>
    %c6_i32_51 = arith.constant 6 : i32
    %266 = vector.broadcast %c6_i32_51 : i32 to vector<7x128xi32>
    %267 = arith.select %264, %266, %260 : vector<7x128xi1>, vector<7x128xi32>
    %268 = arith.cmpf ogt, %265, %262 : vector<7x128xf32>
    %269 = arith.select %268, %265, %262 : vector<7x128xi1>, vector<7x128xf32>
    %270 = arith.select %268, %267, %263 : vector<7x128xi1>, vector<7x128xi32>
    %271 = arith.addi %0, %c3_i32_41 : i32
    %272 = arith.index_cast %271 : i32 to index
    %c0_52 = arith.constant 0 : index
    %c0_53 = arith.constant 0 : index
    %273 = vector.load %arg10[%272, %c0_52, %c0_53] : memref<8x7x128xi32, #tpu.memory_space<vmem>>, vector<1x7x128xi32>
    %274 = vector.shape_cast %273 : vector<1x7x128xi32> to vector<7x128xi32>
    %275 = vector.shape_cast %270 : vector<7x128xi32> to vector<1x7x128xi32>
    tpu.vector_store %arg10[%272, %c0_52, %c0_53], %275 {strides = array<i32>} : memref<8x7x128xi32, #tpu.memory_space<vmem>>, vector<1x7x128xi32>,
    %c0_i32_54 = arith.constant 0 : i32
    %276 = vector.broadcast %c0_i32_54 : i32 to vector<1x128xi32>
    %277 = arith.cmpi ne, %224, %276 : vector<1x128xi32>
    %278 = arith.addf %269, %222 : vector<7x128xf32>
    %279 = vector.shape_cast %277 : vector<1x128xi1> to vector<1x128xi1>
    %280 = vector.broadcast %279 : vector<1x128xi1> to vector<7x128xi1>
    %281 = arith.select %280, %278, %219 : vector<7x128xi1>, vector<7x128xf32>
    %c4_i32_55 = arith.constant 4 : i32
    %282 = arith.index_cast %c4_i32_55 : i32 to index
    %c0_56 = arith.constant 0 : index
    %c0_57 = arith.constant 0 : index
    %283 = vector.load %arg2[%282, %c0_56, %c0_57] : memref<8x7x128xf32, #tpu.memory_space<vmem>>, vector<1x7x128xf32>
    %284 = vector.shape_cast %283 : vector<1x7x128xf32> to vector<7x128xf32>
    %285 = arith.index_cast %c4_i32_55 : i32 to index
    %c0_58 = arith.constant 0 : index
    %286 = vector.load %arg3[%285, %c0_58] : memref<8x128xi32, #tpu.memory_space<vmem>>, vector<1x128xi32>
    %287 = vector.extract_strided_slice %281 {offsets = [0, 0], sizes = [1, 128], strides = [1, 1]} : vector<7x128xf32> to vector<1x128xf32>
    %288 = vector.broadcast %287 : vector<1x128xf32> to vector<7x128xf32>
    %289 = arith.addf %288, %8 : vector<7x128xf32>
    %290 = vector.extract_strided_slice %281 {offsets = [1, 0], sizes = [1, 128], strides = [1, 1]} : vector<7x128xf32> to vector<1x128xf32>
    %291 = vector.broadcast %290 : vector<1x128xf32> to vector<7x128xf32>
    %292 = arith.addf %291, %12 : vector<7x128xf32>
    %293 = vector.extract_strided_slice %281 {offsets = [2, 0], sizes = [1, 128], strides = [1, 1]} : vector<7x128xf32> to vector<1x128xf32>
    %294 = vector.broadcast %293 : vector<1x128xf32> to vector<7x128xf32>
    %295 = arith.addf %294, %16 : vector<7x128xf32>
    %296 = vector.extract_strided_slice %281 {offsets = [3, 0], sizes = [1, 128], strides = [1, 1]} : vector<7x128xf32> to vector<1x128xf32>
    %297 = vector.broadcast %296 : vector<1x128xf32> to vector<7x128xf32>
    %298 = arith.addf %297, %20 : vector<7x128xf32>
    %299 = vector.extract_strided_slice %281 {offsets = [4, 0], sizes = [1, 128], strides = [1, 1]} : vector<7x128xf32> to vector<1x128xf32>
    %300 = vector.broadcast %299 : vector<1x128xf32> to vector<7x128xf32>
    %301 = arith.addf %300, %24 : vector<7x128xf32>
    %302 = vector.extract_strided_slice %281 {offsets = [5, 0], sizes = [1, 128], strides = [1, 1]} : vector<7x128xf32> to vector<1x128xf32>
    %303 = vector.broadcast %302 : vector<1x128xf32> to vector<7x128xf32>
    %304 = arith.addf %303, %28 : vector<7x128xf32>
    %305 = vector.extract_strided_slice %281 {offsets = [6, 0], sizes = [1, 128], strides = [1, 1]} : vector<7x128xf32> to vector<1x128xf32>
    %306 = vector.broadcast %305 : vector<1x128xf32> to vector<7x128xf32>
    %307 = arith.addf %306, %32 : vector<7x128xf32>
    %308 = arith.cmpf ogt, %292, %289 : vector<7x128xf32>
    %309 = arith.select %308, %292, %289 : vector<7x128xi1>, vector<7x128xf32>
    %c1_i32_59 = arith.constant 1 : i32
    %c0_i32_60 = arith.constant 0 : i32
    %310 = vector.broadcast %c1_i32_59 : i32 to vector<7x128xi32>
    %311 = vector.broadcast %c0_i32_60 : i32 to vector<7x128xi32>
    %312 = arith.select %308, %310, %311 : vector<7x128xi1>, vector<7x128xi32>
    %313 = arith.cmpf ogt, %298, %295 : vector<7x128xf32>
    %314 = arith.select %313, %298, %295 : vector<7x128xi1>, vector<7x128xf32>
    %c3_i32_61 = arith.constant 3 : i32
    %c2_i32_62 = arith.constant 2 : i32
    %315 = vector.broadcast %c3_i32_61 : i32 to vector<7x128xi32>
    %316 = vector.broadcast %c2_i32_62 : i32 to vector<7x128xi32>
    %317 = arith.select %313, %315, %316 : vector<7x128xi1>, vector<7x128xi32>
    %318 = arith.cmpf ogt, %304, %301 : vector<7x128xf32>
    %319 = arith.select %318, %304, %301 : vector<7x128xi1>, vector<7x128xf32>
    %c5_i32_63 = arith.constant 5 : i32
    %c4_i32_64 = arith.constant 4 : i32
    %320 = vector.broadcast %c5_i32_63 : i32 to vector<7x128xi32>
    %321 = vector.broadcast %c4_i32_64 : i32 to vector<7x128xi32>
    %322 = arith.select %318, %320, %321 : vector<7x128xi1>, vector<7x128xi32>
    %323 = arith.cmpf ogt, %314, %309 : vector<7x128xf32>
    %324 = arith.select %323, %314, %309 : vector<7x128xi1>, vector<7x128xf32>
    %325 = arith.select %323, %317, %312 : vector<7x128xi1>, vector<7x128xi32>
    %326 = arith.cmpf ogt, %307, %319 : vector<7x128xf32>
    %327 = arith.select %326, %307, %319 : vector<7x128xi1>, vector<7x128xf32>
    %c6_i32_65 = arith.constant 6 : i32
    %328 = vector.broadcast %c6_i32_65 : i32 to vector<7x128xi32>
    %329 = arith.select %326, %328, %322 : vector<7x128xi1>, vector<7x128xi32>
    %330 = arith.cmpf ogt, %327, %324 : vector<7x128xf32>
    %331 = arith.select %330, %327, %324 : vector<7x128xi1>, vector<7x128xf32>
    %332 = arith.select %330, %329, %325 : vector<7x128xi1>, vector<7x128xi32>
    %333 = arith.addi %0, %c4_i32_55 : i32
    %334 = arith.index_cast %333 : i32 to index
    %c0_66 = arith.constant 0 : index
    %c0_67 = arith.constant 0 : index
    %335 = vector.load %arg10[%334, %c0_66, %c0_67] : memref<8x7x128xi32, #tpu.memory_space<vmem>>, vector<1x7x128xi32>
    %336 = vector.shape_cast %335 : vector<1x7x128xi32> to vector<7x128xi32>
    %337 = vector.shape_cast %332 : vector<7x128xi32> to vector<1x7x128xi32>
    tpu.vector_store %arg10[%334, %c0_66, %c0_67], %337 {strides = array<i32>} : memref<8x7x128xi32, #tpu.memory_space<vmem>>, vector<1x7x128xi32>,
    %c0_i32_68 = arith.constant 0 : i32
    %338 = vector.broadcast %c0_i32_68 : i32 to vector<1x128xi32>
    %339 = arith.cmpi ne, %286, %338 : vector<1x128xi32>
    %340 = arith.addf %331, %284 : vector<7x128xf32>
    %341 = vector.shape_cast %339 : vector<1x128xi1> to vector<1x128xi1>
    %342 = vector.broadcast %341 : vector<1x128xi1> to vector<7x128xi1>
    %343 = arith.select %342, %340, %281 : vector<7x128xi1>, vector<7x128xf32>
    %c5_i32_69 = arith.constant 5 : i32
    %344 = arith.index_cast %c5_i32_69 : i32 to index
    %c0_70 = arith.constant 0 : index
    %c0_71 = arith.constant 0 : index
    %345 = vector.load %arg2[%344, %c0_70, %c0_71] : memref<8x7x128xf32, #tpu.memory_space<vmem>>, vector<1x7x128xf32>
    %346 = vector.shape_cast %345 : vector<1x7x128xf32> to vector<7x128xf32>
    %347 = arith.index_cast %c5_i32_69 : i32 to index
    %c0_72 = arith.constant 0 : index
    %348 = vector.load %arg3[%347, %c0_72] : memref<8x128xi32, #tpu.memory_space<vmem>>, vector<1x128xi32>
    %349 = vector.extract_strided_slice %343 {offsets = [0, 0], sizes = [1, 128], strides = [1, 1]} : vector<7x128xf32> to vector<1x128xf32>
    %350 = vector.broadcast %349 : vector<1x128xf32> to vector<7x128xf32>
    %351 = arith.addf %350, %8 : vector<7x128xf32>
    %352 = vector.extract_strided_slice %343 {offsets = [1, 0], sizes = [1, 128], strides = [1, 1]} : vector<7x128xf32> to vector<1x128xf32>
    %353 = vector.broadcast %352 : vector<1x128xf32> to vector<7x128xf32>
    %354 = arith.addf %353, %12 : vector<7x128xf32>
    %355 = vector.extract_strided_slice %343 {offsets = [2, 0], sizes = [1, 128], strides = [1, 1]} : vector<7x128xf32> to vector<1x128xf32>
    %356 = vector.broadcast %355 : vector<1x128xf32> to vector<7x128xf32>
    %357 = arith.addf %356, %16 : vector<7x128xf32>
    %358 = vector.extract_strided_slice %343 {offsets = [3, 0], sizes = [1, 128], strides = [1, 1]} : vector<7x128xf32> to vector<1x128xf32>
    %359 = vector.broadcast %358 : vector<1x128xf32> to vector<7x128xf32>
    %360 = arith.addf %359, %20 : vector<7x128xf32>
    %361 = vector.extract_strided_slice %343 {offsets = [4, 0], sizes = [1, 128], strides = [1, 1]} : vector<7x128xf32> to vector<1x128xf32>
    %362 = vector.broadcast %361 : vector<1x128xf32> to vector<7x128xf32>
    %363 = arith.addf %362, %24 : vector<7x128xf32>
    %364 = vector.extract_strided_slice %343 {offsets = [5, 0], sizes = [1, 128], strides = [1, 1]} : vector<7x128xf32> to vector<1x128xf32>
    %365 = vector.broadcast %364 : vector<1x128xf32> to vector<7x128xf32>
    %366 = arith.addf %365, %28 : vector<7x128xf32>
    %367 = vector.extract_strided_slice %343 {offsets = [6, 0], sizes = [1, 128], strides = [1, 1]} : vector<7x128xf32> to vector<1x128xf32>
    %368 = vector.broadcast %367 : vector<1x128xf32> to vector<7x128xf32>
    %369 = arith.addf %368, %32 : vector<7x128xf32>
    %370 = arith.cmpf ogt, %354, %351 : vector<7x128xf32>
    %371 = arith.select %370, %354, %351 : vector<7x128xi1>, vector<7x128xf32>
    %c1_i32_73 = arith.constant 1 : i32
    %c0_i32_74 = arith.constant 0 : i32
    %372 = vector.broadcast %c1_i32_73 : i32 to vector<7x128xi32>
    %373 = vector.broadcast %c0_i32_74 : i32 to vector<7x128xi32>
    %374 = arith.select %370, %372, %373 : vector<7x128xi1>, vector<7x128xi32>
    %375 = arith.cmpf ogt, %360, %357 : vector<7x128xf32>
    %376 = arith.select %375, %360, %357 : vector<7x128xi1>, vector<7x128xf32>
    %c3_i32_75 = arith.constant 3 : i32
    %c2_i32_76 = arith.constant 2 : i32
    %377 = vector.broadcast %c3_i32_75 : i32 to vector<7x128xi32>
    %378 = vector.broadcast %c2_i32_76 : i32 to vector<7x128xi32>
    %379 = arith.select %375, %377, %378 : vector<7x128xi1>, vector<7x128xi32>
    %380 = arith.cmpf ogt, %366, %363 : vector<7x128xf32>
    %381 = arith.select %380, %366, %363 : vector<7x128xi1>, vector<7x128xf32>
    %c5_i32_77 = arith.constant 5 : i32
    %c4_i32_78 = arith.constant 4 : i32
    %382 = vector.broadcast %c5_i32_77 : i32 to vector<7x128xi32>
    %383 = vector.broadcast %c4_i32_78 : i32 to vector<7x128xi32>
    %384 = arith.select %380, %382, %383 : vector<7x128xi1>, vector<7x128xi32>
    %385 = arith.cmpf ogt, %376, %371 : vector<7x128xf32>
    %386 = arith.select %385, %376, %371 : vector<7x128xi1>, vector<7x128xf32>
    %387 = arith.select %385, %379, %374 : vector<7x128xi1>, vector<7x128xi32>
    %388 = arith.cmpf ogt, %369, %381 : vector<7x128xf32>
    %389 = arith.select %388, %369, %381 : vector<7x128xi1>, vector<7x128xf32>
    %c6_i32_79 = arith.constant 6 : i32
    %390 = vector.broadcast %c6_i32_79 : i32 to vector<7x128xi32>
    %391 = arith.select %388, %390, %384 : vector<7x128xi1>, vector<7x128xi32>
    %392 = arith.cmpf ogt, %389, %386 : vector<7x128xf32>
    %393 = arith.select %392, %389, %386 : vector<7x128xi1>, vector<7x128xf32>
    %394 = arith.select %392, %391, %387 : vector<7x128xi1>, vector<7x128xi32>
    %395 = arith.addi %0, %c5_i32_69 : i32
    %396 = arith.index_cast %395 : i32 to index
    %c0_80 = arith.constant 0 : index
    %c0_81 = arith.constant 0 : index
    %397 = vector.load %arg10[%396, %c0_80, %c0_81] : memref<8x7x128xi32, #tpu.memory_space<vmem>>, vector<1x7x128xi32>
    %398 = vector.shape_cast %397 : vector<1x7x128xi32> to vector<7x128xi32>
    %399 = vector.shape_cast %394 : vector<7x128xi32> to vector<1x7x128xi32>
    tpu.vector_store %arg10[%396, %c0_80, %c0_81], %399 {strides = array<i32>} : memref<8x7x128xi32, #tpu.memory_space<vmem>>, vector<1x7x128xi32>,
    %c0_i32_82 = arith.constant 0 : i32
    %400 = vector.broadcast %c0_i32_82 : i32 to vector<1x128xi32>
    %401 = arith.cmpi ne, %348, %400 : vector<1x128xi32>
    %402 = arith.addf %393, %346 : vector<7x128xf32>
    %403 = vector.shape_cast %401 : vector<1x128xi1> to vector<1x128xi1>
    %404 = vector.broadcast %403 : vector<1x128xi1> to vector<7x128xi1>
    %405 = arith.select %404, %402, %343 : vector<7x128xi1>, vector<7x128xf32>
    %c6_i32_83 = arith.constant 6 : i32
    %406 = arith.index_cast %c6_i32_83 : i32 to index
    %c0_84 = arith.constant 0 : index
    %c0_85 = arith.constant 0 : index
    %407 = vector.load %arg2[%406, %c0_84, %c0_85] : memref<8x7x128xf32, #tpu.memory_space<vmem>>, vector<1x7x128xf32>
    %408 = vector.shape_cast %407 : vector<1x7x128xf32> to vector<7x128xf32>
    %409 = arith.index_cast %c6_i32_83 : i32 to index
    %c0_86 = arith.constant 0 : index
    %410 = vector.load %arg3[%409, %c0_86] : memref<8x128xi32, #tpu.memory_space<vmem>>, vector<1x128xi32>
    %411 = vector.extract_strided_slice %405 {offsets = [0, 0], sizes = [1, 128], strides = [1, 1]} : vector<7x128xf32> to vector<1x128xf32>
    %412 = vector.broadcast %411 : vector<1x128xf32> to vector<7x128xf32>
    %413 = arith.addf %412, %8 : vector<7x128xf32>
    %414 = vector.extract_strided_slice %405 {offsets = [1, 0], sizes = [1, 128], strides = [1, 1]} : vector<7x128xf32> to vector<1x128xf32>
    %415 = vector.broadcast %414 : vector<1x128xf32> to vector<7x128xf32>
    %416 = arith.addf %415, %12 : vector<7x128xf32>
    %417 = vector.extract_strided_slice %405 {offsets = [2, 0], sizes = [1, 128], strides = [1, 1]} : vector<7x128xf32> to vector<1x128xf32>
    %418 = vector.broadcast %417 : vector<1x128xf32> to vector<7x128xf32>
    %419 = arith.addf %418, %16 : vector<7x128xf32>
    %420 = vector.extract_strided_slice %405 {offsets = [3, 0], sizes = [1, 128], strides = [1, 1]} : vector<7x128xf32> to vector<1x128xf32>
    %421 = vector.broadcast %420 : vector<1x128xf32> to vector<7x128xf32>
    %422 = arith.addf %421, %20 : vector<7x128xf32>
    %423 = vector.extract_strided_slice %405 {offsets = [4, 0], sizes = [1, 128], strides = [1, 1]} : vector<7x128xf32> to vector<1x128xf32>
    %424 = vector.broadcast %423 : vector<1x128xf32> to vector<7x128xf32>
    %425 = arith.addf %424, %24 : vector<7x128xf32>
    %426 = vector.extract_strided_slice %405 {offsets = [5, 0], sizes = [1, 128], strides = [1, 1]} : vector<7x128xf32> to vector<1x128xf32>
    %427 = vector.broadcast %426 : vector<1x128xf32> to vector<7x128xf32>
    %428 = arith.addf %427, %28 : vector<7x128xf32>
    %429 = vector.extract_strided_slice %405 {offsets = [6, 0], sizes = [1, 128], strides = [1, 1]} : vector<7x128xf32> to vector<1x128xf32>
    %430 = vector.broadcast %429 : vector<1x128xf32> to vector<7x128xf32>
    %431 = arith.addf %430, %32 : vector<7x128xf32>
    %432 = arith.cmpf ogt, %416, %413 : vector<7x128xf32>
    %433 = arith.select %432, %416, %413 : vector<7x128xi1>, vector<7x128xf32>
    %c1_i32_87 = arith.constant 1 : i32
    %c0_i32_88 = arith.constant 0 : i32
    %434 = vector.broadcast %c1_i32_87 : i32 to vector<7x128xi32>
    %435 = vector.broadcast %c0_i32_88 : i32 to vector<7x128xi32>
    %436 = arith.select %432, %434, %435 : vector<7x128xi1>, vector<7x128xi32>
    %437 = arith.cmpf ogt, %422, %419 : vector<7x128xf32>
    %438 = arith.select %437, %422, %419 : vector<7x128xi1>, vector<7x128xf32>
    %c3_i32_89 = arith.constant 3 : i32
    %c2_i32_90 = arith.constant 2 : i32
    %439 = vector.broadcast %c3_i32_89 : i32 to vector<7x128xi32>
    %440 = vector.broadcast %c2_i32_90 : i32 to vector<7x128xi32>
    %441 = arith.select %437, %439, %440 : vector<7x128xi1>, vector<7x128xi32>
    %442 = arith.cmpf ogt, %428, %425 : vector<7x128xf32>
    %443 = arith.select %442, %428, %425 : vector<7x128xi1>, vector<7x128xf32>
    %c5_i32_91 = arith.constant 5 : i32
    %c4_i32_92 = arith.constant 4 : i32
    %444 = vector.broadcast %c5_i32_91 : i32 to vector<7x128xi32>
    %445 = vector.broadcast %c4_i32_92 : i32 to vector<7x128xi32>
    %446 = arith.select %442, %444, %445 : vector<7x128xi1>, vector<7x128xi32>
    %447 = arith.cmpf ogt, %438, %433 : vector<7x128xf32>
    %448 = arith.select %447, %438, %433 : vector<7x128xi1>, vector<7x128xf32>
    %449 = arith.select %447, %441, %436 : vector<7x128xi1>, vector<7x128xi32>
    %450 = arith.cmpf ogt, %431, %443 : vector<7x128xf32>
    %451 = arith.select %450, %431, %443 : vector<7x128xi1>, vector<7x128xf32>
    %c6_i32_93 = arith.constant 6 : i32
    %452 = vector.broadcast %c6_i32_93 : i32 to vector<7x128xi32>
    %453 = arith.select %450, %452, %446 : vector<7x128xi1>, vector<7x128xi32>
    %454 = arith.cmpf ogt, %451, %448 : vector<7x128xf32>
    %455 = arith.select %454, %451, %448 : vector<7x128xi1>, vector<7x128xf32>
    %456 = arith.select %454, %453, %449 : vector<7x128xi1>, vector<7x128xi32>
    %457 = arith.addi %0, %c6_i32_83 : i32
    %458 = arith.index_cast %457 : i32 to index
    %c0_94 = arith.constant 0 : index
    %c0_95 = arith.constant 0 : index
    %459 = vector.load %arg10[%458, %c0_94, %c0_95] : memref<8x7x128xi32, #tpu.memory_space<vmem>>, vector<1x7x128xi32>
    %460 = vector.shape_cast %459 : vector<1x7x128xi32> to vector<7x128xi32>
    %461 = vector.shape_cast %456 : vector<7x128xi32> to vector<1x7x128xi32>
    tpu.vector_store %arg10[%458, %c0_94, %c0_95], %461 {strides = array<i32>} : memref<8x7x128xi32, #tpu.memory_space<vmem>>, vector<1x7x128xi32>,
    %c0_i32_96 = arith.constant 0 : i32
    %462 = vector.broadcast %c0_i32_96 : i32 to vector<1x128xi32>
    %463 = arith.cmpi ne, %410, %462 : vector<1x128xi32>
    %464 = arith.addf %455, %408 : vector<7x128xf32>
    %465 = vector.shape_cast %463 : vector<1x128xi1> to vector<1x128xi1>
    %466 = vector.broadcast %465 : vector<1x128xi1> to vector<7x128xi1>
    %467 = arith.select %466, %464, %405 : vector<7x128xi1>, vector<7x128xf32>
    %c7_i32 = arith.constant 7 : i32
    %468 = arith.index_cast %c7_i32 : i32 to index
    %c0_97 = arith.constant 0 : index
    %c0_98 = arith.constant 0 : index
    %469 = vector.load %arg2[%468, %c0_97, %c0_98] : memref<8x7x128xf32, #tpu.memory_space<vmem>>, vector<1x7x128xf32>
    %470 = vector.shape_cast %469 : vector<1x7x128xf32> to vector<7x128xf32>
    %471 = arith.index_cast %c7_i32 : i32 to index
    %c0_99 = arith.constant 0 : index
    %472 = vector.load %arg3[%471, %c0_99] : memref<8x128xi32, #tpu.memory_space<vmem>>, vector<1x128xi32>
    %473 = vector.extract_strided_slice %467 {offsets = [0, 0], sizes = [1, 128], strides = [1, 1]} : vector<7x128xf32> to vector<1x128xf32>
    %474 = vector.broadcast %473 : vector<1x128xf32> to vector<7x128xf32>
    %475 = arith.addf %474, %8 : vector<7x128xf32>
    %476 = vector.extract_strided_slice %467 {offsets = [1, 0], sizes = [1, 128], strides = [1, 1]} : vector<7x128xf32> to vector<1x128xf32>
    %477 = vector.broadcast %476 : vector<1x128xf32> to vector<7x128xf32>
    %478 = arith.addf %477, %12 : vector<7x128xf32>
    %479 = vector.extract_strided_slice %467 {offsets = [2, 0], sizes = [1, 128], strides = [1, 1]} : vector<7x128xf32> to vector<1x128xf32>
    %480 = vector.broadcast %479 : vector<1x128xf32> to vector<7x128xf32>
    %481 = arith.addf %480, %16 : vector<7x128xf32>
    %482 = vector.extract_strided_slice %467 {offsets = [3, 0], sizes = [1, 128], strides = [1, 1]} : vector<7x128xf32> to vector<1x128xf32>
    %483 = vector.broadcast %482 : vector<1x128xf32> to vector<7x128xf32>
    %484 = arith.addf %483, %20 : vector<7x128xf32>
    %485 = vector.extract_strided_slice %467 {offsets = [4, 0], sizes = [1, 128], strides = [1, 1]} : vector<7x128xf32> to vector<1x128xf32>
    %486 = vector.broadcast %485 : vector<1x128xf32> to vector<7x128xf32>
    %487 = arith.addf %486, %24 : vector<7x128xf32>
    %488 = vector.extract_strided_slice %467 {offsets = [5, 0], sizes = [1, 128], strides = [1, 1]} : vector<7x128xf32> to vector<1x128xf32>
    %489 = vector.broadcast %488 : vector<1x128xf32> to vector<7x128xf32>
    %490 = arith.addf %489, %28 : vector<7x128xf32>
    %491 = vector.extract_strided_slice %467 {offsets = [6, 0], sizes = [1, 128], strides = [1, 1]} : vector<7x128xf32> to vector<1x128xf32>
    %492 = vector.broadcast %491 : vector<1x128xf32> to vector<7x128xf32>
    %493 = arith.addf %492, %32 : vector<7x128xf32>
    %494 = arith.cmpf ogt, %478, %475 : vector<7x128xf32>
    %495 = arith.select %494, %478, %475 : vector<7x128xi1>, vector<7x128xf32>
    %c1_i32_100 = arith.constant 1 : i32
    %c0_i32_101 = arith.constant 0 : i32
    %496 = vector.broadcast %c1_i32_100 : i32 to vector<7x128xi32>
    %497 = vector.broadcast %c0_i32_101 : i32 to vector<7x128xi32>
    %498 = arith.select %494, %496, %497 : vector<7x128xi1>, vector<7x128xi32>
    %499 = arith.cmpf ogt, %484, %481 : vector<7x128xf32>
    %500 = arith.select %499, %484, %481 : vector<7x128xi1>, vector<7x128xf32>
    %c3_i32_102 = arith.constant 3 : i32
    %c2_i32_103 = arith.constant 2 : i32
    %501 = vector.broadcast %c3_i32_102 : i32 to vector<7x128xi32>
    %502 = vector.broadcast %c2_i32_103 : i32 to vector<7x128xi32>
    %503 = arith.select %499, %501, %502 : vector<7x128xi1>, vector<7x128xi32>
    %504 = arith.cmpf ogt, %490, %487 : vector<7x128xf32>
    %505 = arith.select %504, %490, %487 : vector<7x128xi1>, vector<7x128xf32>
    %c5_i32_104 = arith.constant 5 : i32
    %c4_i32_105 = arith.constant 4 : i32
    %506 = vector.broadcast %c5_i32_104 : i32 to vector<7x128xi32>
    %507 = vector.broadcast %c4_i32_105 : i32 to vector<7x128xi32>
    %508 = arith.select %504, %506, %507 : vector<7x128xi1>, vector<7x128xi32>
    %509 = arith.cmpf ogt, %500, %495 : vector<7x128xf32>
    %510 = arith.select %509, %500, %495 : vector<7x128xi1>, vector<7x128xf32>
    %511 = arith.select %509, %503, %498 : vector<7x128xi1>, vector<7x128xi32>
    %512 = arith.cmpf ogt, %493, %505 : vector<7x128xf32>
    %513 = arith.select %512, %493, %505 : vector<7x128xi1>, vector<7x128xf32>
    %c6_i32_106 = arith.constant 6 : i32
    %514 = vector.broadcast %c6_i32_106 : i32 to vector<7x128xi32>
    %515 = arith.select %512, %514, %508 : vector<7x128xi1>, vector<7x128xi32>
    %516 = arith.cmpf ogt, %513, %510 : vector<7x128xf32>
    %517 = arith.select %516, %513, %510 : vector<7x128xi1>, vector<7x128xf32>
    %518 = arith.select %516, %515, %511 : vector<7x128xi1>, vector<7x128xi32>
    %519 = arith.addi %0, %c7_i32 : i32
    %520 = arith.index_cast %519 : i32 to index
    %c0_107 = arith.constant 0 : index
    %c0_108 = arith.constant 0 : index
    %521 = vector.load %arg10[%520, %c0_107, %c0_108] : memref<8x7x128xi32, #tpu.memory_space<vmem>>, vector<1x7x128xi32>
    %522 = vector.shape_cast %521 : vector<1x7x128xi32> to vector<7x128xi32>
    %523 = vector.shape_cast %518 : vector<7x128xi32> to vector<1x7x128xi32>
    tpu.vector_store %arg10[%520, %c0_107, %c0_108], %523 {strides = array<i32>} : memref<8x7x128xi32, #tpu.memory_space<vmem>>, vector<1x7x128xi32>,
    %c0_i32_109 = arith.constant 0 : i32
    %524 = vector.broadcast %c0_i32_109 : i32 to vector<1x128xi32>
    %525 = arith.cmpi ne, %472, %524 : vector<1x128xi32>
    %526 = arith.addf %517, %470 : vector<7x128xf32>
    %527 = vector.shape_cast %525 : vector<1x128xi1> to vector<1x128xi1>
    %528 = vector.broadcast %527 : vector<1x128xi1> to vector<7x128xi1>
    %529 = arith.select %528, %526, %467 : vector<7x128xi1>, vector<7x128xf32>
    %c8_i32_110 = arith.constant 8 : i32
    %c0_111 = arith.constant 0 : index
    %c0_112 = arith.constant 0 : index
    %530 = vector.load %arg9[%c0_111, %c0_112] : memref<7x128xf32, #tpu.memory_space<vmem>>, vector<7x128xf32>
    tpu.vector_store %arg9[%c0_111, %c0_112], %529 {strides = array<i32>} : memref<7x128xf32, #tpu.memory_space<vmem>>, vector<7x128xf32>,
    %c0_i32_113 = arith.constant 0 : i32
    %531 = arith.cmpi eq, %arg1, %c0_i32_113 : i32
    %532 = arith.extui %531 : i1 to i32
    %c0_i32_114 = arith.constant 0 : i32
    %533 = arith.cmpi ne, %532, %c0_i32_114 : i32
    scf.if %533 {
      %534 = vector.extract_strided_slice %529 {offsets = [0, 0], sizes = [1, 128], strides = [1, 1]} : vector<7x128xf32> to vector<1x128xf32>
      %535 = vector.extract_strided_slice %8 {offsets = [6, 0], sizes = [1, 128], strides = [1, 1]} : vector<7x128xf32> to vector<1x128xf32>
      %536 = arith.addf %534, %535 : vector<1x128xf32>
      %537 = vector.extract_strided_slice %529 {offsets = [1, 0], sizes = [1, 128], strides = [1, 1]} : vector<7x128xf32> to vector<1x128xf32>
      %538 = vector.extract_strided_slice %12 {offsets = [6, 0], sizes = [1, 128], strides = [1, 1]} : vector<7x128xf32> to vector<1x128xf32>
      %539 = arith.addf %537, %538 : vector<1x128xf32>
      %540 = vector.extract_strided_slice %529 {offsets = [2, 0], sizes = [1, 128], strides = [1, 1]} : vector<7x128xf32> to vector<1x128xf32>
      %541 = vector.extract_strided_slice %16 {offsets = [6, 0], sizes = [1, 128], strides = [1, 1]} : vector<7x128xf32> to vector<1x128xf32>
      %542 = arith.addf %540, %541 : vector<1x128xf32>
      %543 = vector.extract_strided_slice %529 {offsets = [3, 0], sizes = [1, 128], strides = [1, 1]} : vector<7x128xf32> to vector<1x128xf32>
      %544 = vector.extract_strided_slice %20 {offsets = [6, 0], sizes = [1, 128], strides = [1, 1]} : vector<7x128xf32> to vector<1x128xf32>
      %545 = arith.addf %543, %544 : vector<1x128xf32>
      %546 = vector.extract_strided_slice %529 {offsets = [4, 0], sizes = [1, 128], strides = [1, 1]} : vector<7x128xf32> to vector<1x128xf32>
      %547 = vector.extract_strided_slice %24 {offsets = [6, 0], sizes = [1, 128], strides = [1, 1]} : vector<7x128xf32> to vector<1x128xf32>
      %548 = arith.addf %546, %547 : vector<1x128xf32>
      %549 = vector.extract_strided_slice %529 {offsets = [5, 0], sizes = [1, 128], strides = [1, 1]} : vector<7x128xf32> to vector<1x128xf32>
      %550 = vector.extract_strided_slice %28 {offsets = [6, 0], sizes = [1, 128], strides = [1, 1]} : vector<7x128xf32> to vector<1x128xf32>
      %551 = arith.addf %549, %550 : vector<1x128xf32>
      %552 = vector.extract_strided_slice %529 {offsets = [6, 0], sizes = [1, 128], strides = [1, 1]} : vector<7x128xf32> to vector<1x128xf32>
      %553 = vector.extract_strided_slice %32 {offsets = [6, 0], sizes = [1, 128], strides = [1, 1]} : vector<7x128xf32> to vector<1x128xf32>
      %554 = arith.addf %552, %553 : vector<1x128xf32>
      %555 = arith.cmpf ogt, %539, %536 : vector<1x128xf32>
      %556 = arith.select %555, %539, %536 : vector<1x128xi1>, vector<1x128xf32>
      %c1_i32_115 = arith.constant 1 : i32
      %c0_i32_116 = arith.constant 0 : i32
      %557 = vector.broadcast %c1_i32_115 : i32 to vector<1x128xi32>
      %558 = vector.broadcast %c0_i32_116 : i32 to vector<1x128xi32>
      %559 = arith.select %555, %557, %558 : vector<1x128xi1>, vector<1x128xi32>
      %560 = arith.cmpf ogt, %545, %542 : vector<1x128xf32>
      %561 = arith.select %560, %545, %542 : vector<1x128xi1>, vector<1x128xf32>
      %c3_i32_117 = arith.constant 3 : i32
      %c2_i32_118 = arith.constant 2 : i32
      %562 = vector.broadcast %c3_i32_117 : i32 to vector<1x128xi32>
      %563 = vector.broadcast %c2_i32_118 : i32 to vector<1x128xi32>
      %564 = arith.select %560, %562, %563 : vector<1x128xi1>, vector<1x128xi32>
      %565 = arith.cmpf ogt, %551, %548 : vector<1x128xf32>
      %566 = arith.select %565, %551, %548 : vector<1x128xi1>, vector<1x128xf32>
      %c5_i32_119 = arith.constant 5 : i32
      %c4_i32_120 = arith.constant 4 : i32
      %567 = vector.broadcast %c5_i32_119 : i32 to vector<1x128xi32>
      %568 = vector.broadcast %c4_i32_120 : i32 to vector<1x128xi32>
      %569 = arith.select %565, %567, %568 : vector<1x128xi1>, vector<1x128xi32>
      %570 = arith.cmpf ogt, %561, %556 : vector<1x128xf32>
      %571 = arith.select %570, %561, %556 : vector<1x128xi1>, vector<1x128xf32>
      %572 = arith.select %570, %564, %559 : vector<1x128xi1>, vector<1x128xi32>
      %573 = arith.cmpf ogt, %554, %566 : vector<1x128xf32>
      %574 = arith.select %573, %554, %566 : vector<1x128xi1>, vector<1x128xf32>
      %c6_i32_121 = arith.constant 6 : i32
      %575 = vector.broadcast %c6_i32_121 : i32 to vector<1x128xi32>
      %576 = arith.select %573, %575, %569 : vector<1x128xi1>, vector<1x128xi32>
      %577 = arith.cmpf ogt, %574, %571 : vector<1x128xf32>
      %578 = arith.select %577, %574, %571 : vector<1x128xi1>, vector<1x128xf32>
      %579 = arith.select %577, %576, %572 : vector<1x128xi1>, vector<1x128xi32>
      %c0_122 = arith.constant 0 : index
      %c0_123 = arith.constant 0 : index
      %580 = vector.load %arg7[%c0_122, %c0_123] : memref<1x128xi32, #tpu.memory_space<vmem>>, vector<1x128xi32>
      tpu.vector_store %arg7[%c0_122, %c0_123], %579 {strides = array<i32>} : memref<1x128xi32, #tpu.memory_space<vmem>>, vector<1x128xi32>,
      %cst = arith.constant 0.000000e+00 : f32
      %581 = vector.broadcast %cst : f32 to vector<1x128xf32>
      %582 = arith.subf %536, %578 : vector<1x128xf32>
      %583 = math.exp %582 : vector<1x128xf32>
      %584 = arith.addf %581, %583 : vector<1x128xf32>
      %585 = arith.subf %539, %578 : vector<1x128xf32>
      %586 = math.exp %585 : vector<1x128xf32>
      %587 = arith.addf %584, %586 : vector<1x128xf32>
      %588 = arith.subf %542, %578 : vector<1x128xf32>
      %589 = math.exp %588 : vector<1x128xf32>
      %590 = arith.addf %587, %589 : vector<1x128xf32>
      %591 = arith.subf %545, %578 : vector<1x128xf32>
      %592 = math.exp %591 : vector<1x128xf32>
      %593 = arith.addf %590, %592 : vector<1x128xf32>
      %594 = arith.subf %548, %578 : vector<1x128xf32>
      %595 = math.exp %594 : vector<1x128xf32>
      %596 = arith.addf %593, %595 : vector<1x128xf32>
      %597 = arith.subf %551, %578 : vector<1x128xf32>
      %598 = math.exp %597 : vector<1x128xf32>
      %599 = arith.addf %596, %598 : vector<1x128xf32>
      %600 = arith.subf %554, %578 : vector<1x128xf32>
      %601 = math.exp %600 : vector<1x128xf32>
      %602 = arith.addf %599, %601 : vector<1x128xf32>
      %603 = math.log %602 : vector<1x128xf32>
      %604 = arith.addf %578, %603 : vector<1x128xf32>
      %c0_124 = arith.constant 0 : index
      %c0_125 = arith.constant 0 : index
      %605 = vector.load %arg8[%c0_124, %c0_125] : memref<1x128xf32, #tpu.memory_space<vmem>>, vector<1x128xf32>
      tpu.vector_store %arg8[%c0_124, %c0_125], %604 {strides = array<i32>} : memref<1x128xf32, #tpu.memory_space<vmem>>, vector<1x128xf32>,
      %c0_126 = arith.constant 0 : index
      %c0_127 = arith.constant 0 : index
      %606 = vector.load %arg5[%c0_126, %c0_127] : memref<1x128xi32, #tpu.memory_space<vmem>>, vector<1x128xi32>
      %607 = tpu.iota {dimensions = array<i32: 0>} : vector<7x128xi32>
      %c0_i32_128 = arith.constant 0 : i32
      %c7_i32_129 = arith.constant 7 : i32
      %608 = arith.subi %c7_i32_129, %c0_i32_128 : i32
      %609 = arith.index_cast %608 : i32 to index
      %c0_130 = arith.constant 0 : index
      %610 = vector.load %arg6[%609, %c0_130] : memref<8x128xi32, #tpu.memory_space<vmem>>, vector<1x128xi32>
      tpu.vector_store %arg6[%609, %c0_130], %579 {strides = array<i32>} : memref<8x128xi32, #tpu.memory_space<vmem>>, vector<1x128xi32>,
      %611 = arith.index_cast %608 : i32 to index
      %c0_131 = arith.constant 0 : index
      %c0_132 = arith.constant 0 : index
      %612 = vector.load %arg10[%611, %c0_131, %c0_132] : memref<8x7x128xi32, #tpu.memory_space<vmem>>, vector<1x7x128xi32>
      %613 = vector.shape_cast %612 : vector<1x7x128xi32> to vector<7x128xi32>
      %614 = vector.broadcast %579 : vector<1x128xi32> to vector<7x128xi32>
      %615 = arith.cmpi eq, %607, %614 : vector<7x128xi32>
      %c0_i32_133 = arith.constant 0 : i32
      %616 = vector.broadcast %c0_i32_133 : i32 to vector<7x128xi32>
      %617 = arith.select %615, %613, %616 : vector<7x128xi1>, vector<7x128xi32>
      %cst_134 = arith.constant dense<0> : vector<128xi32>
      %618 = vector.multi_reduction <add>, %617, %cst_134 [0] : vector<7x128xi32> to vector<128xi32>
      %619 = vector.shape_cast %618 : vector<128xi32> to vector<1x128xi32>
      %c1_i32_135 = arith.constant 1 : i32
      %620 = arith.cmpi sge, %608, %c1_i32_135 : i32
      %621 = vector.broadcast %608 : i32 to vector<1x128xi32>
      %622 = arith.cmpi slt, %621, %606 : vector<1x128xi32>
      %623 = vector.broadcast %620 : i1 to vector<1x128xi1>
      %624 = arith.andi %623, %622 : vector<1x128xi1>
      %625 = arith.select %624, %619, %579 : vector<1x128xi1>, vector<1x128xi32>
      %c1_i32_136 = arith.constant 1 : i32
      %c7_i32_137 = arith.constant 7 : i32
      %626 = arith.subi %c7_i32_137, %c1_i32_136 : i32
      %627 = arith.index_cast %626 : i32 to index
      %c0_138 = arith.constant 0 : index
      %628 = vector.load %arg6[%627, %c0_138] : memref<8x128xi32, #tpu.memory_space<vmem>>, vector<1x128xi32>
      tpu.vector_store %arg6[%627, %c0_138], %625 {strides = array<i32>} : memref<8x128xi32, #tpu.memory_space<vmem>>, vector<1x128xi32>,
      %629 = arith.index_cast %626 : i32 to index
      %c0_139 = arith.constant 0 : index
      %c0_140 = arith.constant 0 : index
      %630 = vector.load %arg10[%629, %c0_139, %c0_140] : memref<8x7x128xi32, #tpu.memory_space<vmem>>, vector<1x7x128xi32>
      %631 = vector.shape_cast %630 : vector<1x7x128xi32> to vector<7x128xi32>
      %632 = vector.broadcast %625 : vector<1x128xi32> to vector<7x128xi32>
      %633 = arith.cmpi eq, %607, %632 : vector<7x128xi32>
      %c0_i32_141 = arith.constant 0 : i32
      %634 = vector.broadcast %c0_i32_141 : i32 to vector<7x128xi32>
      %635 = arith.select %633, %631, %634 : vector<7x128xi1>, vector<7x128xi32>
      %cst_142 = arith.constant dense<0> : vector<128xi32>
      %636 = vector.multi_reduction <add>, %635, %cst_142 [0] : vector<7x128xi32> to vector<128xi32>
      %637 = vector.shape_cast %636 : vector<128xi32> to vector<1x128xi32>
      %c1_i32_143 = arith.constant 1 : i32
      %638 = arith.cmpi sge, %626, %c1_i32_143 : i32
      %639 = vector.broadcast %626 : i32 to vector<1x128xi32>
      %640 = arith.cmpi slt, %639, %606 : vector<1x128xi32>
      %641 = vector.broadcast %638 : i1 to vector<1x128xi1>
      %642 = arith.andi %641, %640 : vector<1x128xi1>
      %643 = arith.select %642, %637, %625 : vector<1x128xi1>, vector<1x128xi32>
      %c2_i32_144 = arith.constant 2 : i32
      %c7_i32_145 = arith.constant 7 : i32
      %644 = arith.subi %c7_i32_145, %c2_i32_144 : i32
      %645 = arith.index_cast %644 : i32 to index
      %c0_146 = arith.constant 0 : index
      %646 = vector.load %arg6[%645, %c0_146] : memref<8x128xi32, #tpu.memory_space<vmem>>, vector<1x128xi32>
      tpu.vector_store %arg6[%645, %c0_146], %643 {strides = array<i32>} : memref<8x128xi32, #tpu.memory_space<vmem>>, vector<1x128xi32>,
      %647 = arith.index_cast %644 : i32 to index
      %c0_147 = arith.constant 0 : index
      %c0_148 = arith.constant 0 : index
      %648 = vector.load %arg10[%647, %c0_147, %c0_148] : memref<8x7x128xi32, #tpu.memory_space<vmem>>, vector<1x7x128xi32>
      %649 = vector.shape_cast %648 : vector<1x7x128xi32> to vector<7x128xi32>
      %650 = vector.broadcast %643 : vector<1x128xi32> to vector<7x128xi32>
      %651 = arith.cmpi eq, %607, %650 : vector<7x128xi32>
      %c0_i32_149 = arith.constant 0 : i32
      %652 = vector.broadcast %c0_i32_149 : i32 to vector<7x128xi32>
      %653 = arith.select %651, %649, %652 : vector<7x128xi1>, vector<7x128xi32>
      %cst_150 = arith.constant dense<0> : vector<128xi32>
      %654 = vector.multi_reduction <add>, %653, %cst_150 [0] : vector<7x128xi32> to vector<128xi32>
      %655 = vector.shape_cast %654 : vector<128xi32> to vector<1x128xi32>
      %c1_i32_151 = arith.constant 1 : i32
      %656 = arith.cmpi sge, %644, %c1_i32_151 : i32
      %657 = vector.broadcast %644 : i32 to vector<1x128xi32>
      %658 = arith.cmpi slt, %657, %606 : vector<1x128xi32>
      %659 = vector.broadcast %656 : i1 to vector<1x128xi1>
      %660 = arith.andi %659, %658 : vector<1x128xi1>
      %661 = arith.select %660, %655, %643 : vector<1x128xi1>, vector<1x128xi32>
      %c3_i32_152 = arith.constant 3 : i32
      %c7_i32_153 = arith.constant 7 : i32
      %662 = arith.subi %c7_i32_153, %c3_i32_152 : i32
      %663 = arith.index_cast %662 : i32 to index
      %c0_154 = arith.constant 0 : index
      %664 = vector.load %arg6[%663, %c0_154] : memref<8x128xi32, #tpu.memory_space<vmem>>, vector<1x128xi32>
      tpu.vector_store %arg6[%663, %c0_154], %661 {strides = array<i32>} : memref<8x128xi32, #tpu.memory_space<vmem>>, vector<1x128xi32>,
      %665 = arith.index_cast %662 : i32 to index
      %c0_155 = arith.constant 0 : index
      %c0_156 = arith.constant 0 : index
      %666 = vector.load %arg10[%665, %c0_155, %c0_156] : memref<8x7x128xi32, #tpu.memory_space<vmem>>, vector<1x7x128xi32>
      %667 = vector.shape_cast %666 : vector<1x7x128xi32> to vector<7x128xi32>
      %668 = vector.broadcast %661 : vector<1x128xi32> to vector<7x128xi32>
      %669 = arith.cmpi eq, %607, %668 : vector<7x128xi32>
      %c0_i32_157 = arith.constant 0 : i32
      %670 = vector.broadcast %c0_i32_157 : i32 to vector<7x128xi32>
      %671 = arith.select %669, %667, %670 : vector<7x128xi1>, vector<7x128xi32>
      %cst_158 = arith.constant dense<0> : vector<128xi32>
      %672 = vector.multi_reduction <add>, %671, %cst_158 [0] : vector<7x128xi32> to vector<128xi32>
      %673 = vector.shape_cast %672 : vector<128xi32> to vector<1x128xi32>
      %c1_i32_159 = arith.constant 1 : i32
      %674 = arith.cmpi sge, %662, %c1_i32_159 : i32
      %675 = vector.broadcast %662 : i32 to vector<1x128xi32>
      %676 = arith.cmpi slt, %675, %606 : vector<1x128xi32>
      %677 = vector.broadcast %674 : i1 to vector<1x128xi1>
      %678 = arith.andi %677, %676 : vector<1x128xi1>
      %679 = arith.select %678, %673, %661 : vector<1x128xi1>, vector<1x128xi32>
      %c4_i32_160 = arith.constant 4 : i32
      %c7_i32_161 = arith.constant 7 : i32
      %680 = arith.subi %c7_i32_161, %c4_i32_160 : i32
      %681 = arith.index_cast %680 : i32 to index
      %c0_162 = arith.constant 0 : index
      %682 = vector.load %arg6[%681, %c0_162] : memref<8x128xi32, #tpu.memory_space<vmem>>, vector<1x128xi32>
      tpu.vector_store %arg6[%681, %c0_162], %679 {strides = array<i32>} : memref<8x128xi32, #tpu.memory_space<vmem>>, vector<1x128xi32>,
      %683 = arith.index_cast %680 : i32 to index
      %c0_163 = arith.constant 0 : index
      %c0_164 = arith.constant 0 : index
      %684 = vector.load %arg10[%683, %c0_163, %c0_164] : memref<8x7x128xi32, #tpu.memory_space<vmem>>, vector<1x7x128xi32>
      %685 = vector.shape_cast %684 : vector<1x7x128xi32> to vector<7x128xi32>
      %686 = vector.broadcast %679 : vector<1x128xi32> to vector<7x128xi32>
      %687 = arith.cmpi eq, %607, %686 : vector<7x128xi32>
      %c0_i32_165 = arith.constant 0 : i32
      %688 = vector.broadcast %c0_i32_165 : i32 to vector<7x128xi32>
      %689 = arith.select %687, %685, %688 : vector<7x128xi1>, vector<7x128xi32>
      %cst_166 = arith.constant dense<0> : vector<128xi32>
      %690 = vector.multi_reduction <add>, %689, %cst_166 [0] : vector<7x128xi32> to vector<128xi32>
      %691 = vector.shape_cast %690 : vector<128xi32> to vector<1x128xi32>
      %c1_i32_167 = arith.constant 1 : i32
      %692 = arith.cmpi sge, %680, %c1_i32_167 : i32
      %693 = vector.broadcast %680 : i32 to vector<1x128xi32>
      %694 = arith.cmpi slt, %693, %606 : vector<1x128xi32>
      %695 = vector.broadcast %692 : i1 to vector<1x128xi1>
      %696 = arith.andi %695, %694 : vector<1x128xi1>
      %697 = arith.select %696, %691, %679 : vector<1x128xi1>, vector<1x128xi32>
      %c5_i32_168 = arith.constant 5 : i32
      %c7_i32_169 = arith.constant 7 : i32
      %698 = arith.subi %c7_i32_169, %c5_i32_168 : i32
      %699 = arith.index_cast %698 : i32 to index
      %c0_170 = arith.constant 0 : index
      %700 = vector.load %arg6[%699, %c0_170] : memref<8x128xi32, #tpu.memory_space<vmem>>, vector<1x128xi32>
      tpu.vector_store %arg6[%699, %c0_170], %697 {strides = array<i32>} : memref<8x128xi32, #tpu.memory_space<vmem>>, vector<1x128xi32>,
      %701 = arith.index_cast %698 : i32 to index
      %c0_171 = arith.constant 0 : index
      %c0_172 = arith.constant 0 : index
      %702 = vector.load %arg10[%701, %c0_171, %c0_172] : memref<8x7x128xi32, #tpu.memory_space<vmem>>, vector<1x7x128xi32>
      %703 = vector.shape_cast %702 : vector<1x7x128xi32> to vector<7x128xi32>
      %704 = vector.broadcast %697 : vector<1x128xi32> to vector<7x128xi32>
      %705 = arith.cmpi eq, %607, %704 : vector<7x128xi32>
      %c0_i32_173 = arith.constant 0 : i32
      %706 = vector.broadcast %c0_i32_173 : i32 to vector<7x128xi32>
      %707 = arith.select %705, %703, %706 : vector<7x128xi1>, vector<7x128xi32>
      %cst_174 = arith.constant dense<0> : vector<128xi32>
      %708 = vector.multi_reduction <add>, %707, %cst_174 [0] : vector<7x128xi32> to vector<128xi32>
      %709 = vector.shape_cast %708 : vector<128xi32> to vector<1x128xi32>
      %c1_i32_175 = arith.constant 1 : i32
      %710 = arith.cmpi sge, %698, %c1_i32_175 : i32
      %711 = vector.broadcast %698 : i32 to vector<1x128xi32>
      %712 = arith.cmpi slt, %711, %606 : vector<1x128xi32>
      %713 = vector.broadcast %710 : i1 to vector<1x128xi1>
      %714 = arith.andi %713, %712 : vector<1x128xi1>
      %715 = arith.select %714, %709, %697 : vector<1x128xi1>, vector<1x128xi32>
      %c6_i32_176 = arith.constant 6 : i32
      %c7_i32_177 = arith.constant 7 : i32
      %716 = arith.subi %c7_i32_177, %c6_i32_176 : i32
      %717 = arith.index_cast %716 : i32 to index
      %c0_178 = arith.constant 0 : index
      %718 = vector.load %arg6[%717, %c0_178] : memref<8x128xi32, #tpu.memory_space<vmem>>, vector<1x128xi32>
      tpu.vector_store %arg6[%717, %c0_178], %715 {strides = array<i32>} : memref<8x128xi32, #tpu.memory_space<vmem>>, vector<1x128xi32>,
      %719 = arith.index_cast %716 : i32 to index
      %c0_179 = arith.constant 0 : index
      %c0_180 = arith.constant 0 : index
      %720 = vector.load %arg10[%719, %c0_179, %c0_180] : memref<8x7x128xi32, #tpu.memory_space<vmem>>, vector<1x7x128xi32>
      %721 = vector.shape_cast %720 : vector<1x7x128xi32> to vector<7x128xi32>
      %722 = vector.broadcast %715 : vector<1x128xi32> to vector<7x128xi32>
      %723 = arith.cmpi eq, %607, %722 : vector<7x128xi32>
      %c0_i32_181 = arith.constant 0 : i32
      %724 = vector.broadcast %c0_i32_181 : i32 to vector<7x128xi32>
      %725 = arith.select %723, %721, %724 : vector<7x128xi1>, vector<7x128xi32>
      %cst_182 = arith.constant dense<0> : vector<128xi32>
      %726 = vector.multi_reduction <add>, %725, %cst_182 [0] : vector<7x128xi32> to vector<128xi32>
      %727 = vector.shape_cast %726 : vector<128xi32> to vector<1x128xi32>
      %c1_i32_183 = arith.constant 1 : i32
      %728 = arith.cmpi sge, %716, %c1_i32_183 : i32
      %729 = vector.broadcast %716 : i32 to vector<1x128xi32>
      %730 = arith.cmpi slt, %729, %606 : vector<1x128xi32>
      %731 = vector.broadcast %728 : i1 to vector<1x128xi1>
      %732 = arith.andi %731, %730 : vector<1x128xi1>
      %733 = arith.select %732, %727, %715 : vector<1x128xi1>, vector<1x128xi32>
      %c7_i32_184 = arith.constant 7 : i32
      %c7_i32_185 = arith.constant 7 : i32
      %734 = arith.subi %c7_i32_185, %c7_i32_184 : i32
      %735 = arith.index_cast %734 : i32 to index
      %c0_186 = arith.constant 0 : index
      %736 = vector.load %arg6[%735, %c0_186] : memref<8x128xi32, #tpu.memory_space<vmem>>, vector<1x128xi32>
      tpu.vector_store %arg6[%735, %c0_186], %733 {strides = array<i32>} : memref<8x128xi32, #tpu.memory_space<vmem>>, vector<1x128xi32>,
      %737 = arith.index_cast %734 : i32 to index
      %c0_187 = arith.constant 0 : index
      %c0_188 = arith.constant 0 : index
      %738 = vector.load %arg10[%737, %c0_187, %c0_188] : memref<8x7x128xi32, #tpu.memory_space<vmem>>, vector<1x7x128xi32>
      %739 = vector.shape_cast %738 : vector<1x7x128xi32> to vector<7x128xi32>
      %740 = vector.broadcast %733 : vector<1x128xi32> to vector<7x128xi32>
      %741 = arith.cmpi eq, %607, %740 : vector<7x128xi32>
      %c0_i32_189 = arith.constant 0 : i32
      %742 = vector.broadcast %c0_i32_189 : i32 to vector<7x128xi32>
      %743 = arith.select %741, %739, %742 : vector<7x128xi1>, vector<7x128xi32>
      %cst_190 = arith.constant dense<0> : vector<128xi32>
      %744 = vector.multi_reduction <add>, %743, %cst_190 [0] : vector<7x128xi32> to vector<128xi32>
      %745 = vector.shape_cast %744 : vector<128xi32> to vector<1x128xi32>
      %c1_i32_191 = arith.constant 1 : i32
      %746 = arith.cmpi sge, %734, %c1_i32_191 : i32
      %747 = vector.broadcast %734 : i32 to vector<1x128xi32>
      %748 = arith.cmpi slt, %747, %606 : vector<1x128xi32>
      %749 = vector.broadcast %746 : i1 to vector<1x128xi1>
      %750 = arith.andi %749, %748 : vector<1x128xi1>
      %751 = arith.select %750, %745, %733 : vector<1x128xi1>, vector<1x128xi32>
      %c8_i32_192 = arith.constant 8 : i32
    } else {
    }
    return
  }
  func.func @transform_0(%arg0: i32, %arg1: i32) -> (i32, i32, i32) {
    %c0_i32 = arith.constant 0 : i32
    %c0_i32_0 = arith.constant 0 : i32
    return %arg1, %c0_i32, %arg0 : i32, i32, i32
  }
  func.func @transform_1(%arg0: i32, %arg1: i32) -> (i32, i32) {
    %c0_i32 = arith.constant 0 : i32
    return %arg1, %arg0 : i32, i32
  }
  func.func @transform_2(%arg0: i32, %arg1: i32) -> (i32, i32, i32) {
    %c0_i32 = arith.constant 0 : i32
    %c0_i32_0 = arith.constant 0 : i32
    %c0_i32_1 = arith.constant 0 : i32
    %c0_i32_2 = arith.constant 0 : i32
    return %c0_i32, %c0_i32_0, %c0_i32_1 : i32, i32, i32
  }
  func.func @transform_3(%arg0: i32, %arg1: i32) -> (i32, i32) {
    %c0_i32 = arith.constant 0 : i32
    %c0_i32_0 = arith.constant 0 : i32
    return %c0_i32, %arg0 : i32, i32
  }
  func.func @transform_4(%arg0: i32, %arg1: i32) -> (i32, i32) {
    %c0_i32 = arith.constant 0 : i32
    %c0_i32_0 = arith.constant 0 : i32
    return %c0_i32, %arg0 : i32, i32
  }
  func.func @transform_5(%arg0: i32, %arg1: i32) -> (i32, i32) {
    %c0_i32 = arith.constant 0 : i32
    %c0_i32_0 = arith.constant 0 : i32
    return %c0_i32, %arg0 : i32, i32
  }
  func.func @transform_6(%arg0: i32, %arg1: i32) -> (i32, i32) {
    %c0_i32 = arith.constant 0 : i32
    %c0_i32_0 = arith.constant 0 : i32
    return %c0_i32, %arg0 : i32, i32
  }
}

</mosaic_0001>

<bundles_post_ra>
// kernel: tpu_custom_call.1
= control target key start
LH: loop header
LB: loop body
LE: loop exit
PB: predicated region body
PF: predicated region fallthrough
CT: control target
= control target key end

     0   :  { %12 = vsyncpa [#allocation5], 0  ;;  %v27_v2 = vlaneseq  ;;  %v1052_v3 = vmov 0   ;;  %s1477_s0 = inlined_call_operand.vmem [shape: f32[8,7,128], index: 0, kind: input, shape index: {}]   ;;  %s1478_s1 = inlined_call_operand.vmem [shape: s32[8,128], index: 1, kind: input, shape index: {}]   ;;  %s1479_s2 = inlined_call_operand.vmem [shape: f32[7,7,1], index: 2, kind: input, shape index: {}]   ;;  %s1480_s3 = inlined_call_operand.vmem [shape: s32[1,128], index: 3, kind: input, shape index: {}]   ;;  %s1481_s4 = inlined_call_operand.hbm [shape: s32[8,128], index: 4, kind: output, shape index: {0}]   ;;  %s1482_s5 = inlined_call_operand.hbm [shape: s32[1,128], index: 5, kind: output, shape index: {1}]   ;;  %s1483_s6 = inlined_call_operand.hbm [shape: f32[1,128], index: 6, kind: output, shape index: {2}]  }
   0x1   :  { %v34_v0 = vld [vmem:[%s1479_s2 + $0x10] sm:$0x7f]  ;;  %v32_v1 = vld [vmem:[%s1479_s2] sm:$0x7f]  ;;  %965 = vset.pattern.permute.xlu1 %v1052_v3  ;;  %964 = vset.pattern.permute.xlu0 %v1052_v3  ;;  %v35_v5 = vld [vmem:[%s1479_s2 + $0x18] sm:$0x7f] }
   0x2   :  { %51 = vperm.xlu1 %965, %v34_v0   ;;  %41 = vperm.xlu0 %964, %v32_v1   ;;  %v1103_v4 = vshrl.u32 %v27_v2, 7  ;;  %v33_v6 = vld [vmem:[%s1479_s2 + $0x8] sm:$0x7f] }
   0x3   :  { %13 = vsyncpa [#allocation7], 0  ;;  %v1053_v7 = vmov -10000.0   ;;  %v37_v9 = vld [vmem:[%s1479_s2 + $0x28] sm:$0x7f] }
   0x4   :  { %vm29_vm0 = vcmp.eq.s32.totalorder %v1103_v4, 5  ;;  %v36_v10 = vld [vmem:[%s1479_s2 + $0x20] sm:$0x7f]  ;;  %v38_v11 = vld [vmem:[%s1479_s2 + $0x30] sm:$0x7f]  ;;  %v1122_v12 = vsub.s32 2, %v1103_v4 }
   0x5   :  { %v30_v8 = vsel %vm29_vm0, 0.0, %v1053_v7  ;;  %v1125_v13 = vsub.s32 0, %v1103_v4  ;;  %v1128_v14 = vsub.s32 3, %v1103_v4  ;;  %v1131_v15 = vsub.s32 1, %v1103_v4  ;;  %v76_v34 = vld [vmem:[%s1478_s1] sm:$0x1] }
   0x6   :  { %56 = vperm.xlu1 %965, %v35_v5   ;;  %46 = vperm.xlu0 %964, %v33_v6   ;;  %31 = vst [vmem:[#allocation2] sm:$0x7f] %v30_v8  ;;  %v1138_v19 = vsub.s32 5, %v1103_v4  ;;  %v1141_v20 = vsub.s32 4, %v1103_v4  ;;  %v1154_v29 = vsub.s32 6, %v1103_v4  ;;  %vm133_vm3 = vcmp.ne.s32.totalorder %v76_v34, 0 }
   0x7   :  { %v135_v42 = vsel %vm133_vm3, 1, %v1052_v3  ;;  %v75_v47 = vld [vmem:[%s1477_s0] sm:$0x7f] }
   0x8   :  { %v139_v46 = vrot.slane %v135_v42, %v1125_v13  ;;  %v144_v52 = vld [vmem:[%s1478_s1 + $0x1] sm:$0x1] }
   0x9   :  { %vm202_vm9 = vcmp.ne.s32.totalorder %v144_v52, 0 }
   0xa   :  { %66 = vperm.xlu1 %965, %v37_v9   ;;  %61 = vperm.xlu0 %964, %v36_v10   ;;  %vm140_vm8 = vcmp.eq.s32.totalorder %v139_v46, 1  ;;  %v204_v5 = vsel %vm202_vm9, 1, %v1052_v3  ;;  %v1054_v9 = vmov 2  }
   0xd   :  { %v74_v16 = vld [vmem:[#allocation2] sm:$0x7f] }
   0xe   :  { %71 = vperm.xlu0 %964, %v38_v11   ;;  %v90_v21 = vrot.slane %v74_v16, %v1122_v12  ;;  %v80_v22 = vrot.slane %v74_v16, %v1125_v13  ;;  %v95_v23 = vrot.slane %v74_v16, %v1128_v14  ;;  %v85_v24 = vrot.slane %v74_v16, %v1131_v15 }
   0xf   :  { %v105_v27 = vrot.slane %v74_v16, %v1138_v19  ;;  %v100_v28 = vrot.slane %v74_v16, %v1141_v20  ;;  %v110_v39 = vrot.slane %v74_v16, %v1154_v29 }
  0x81   :  { %v1133_v17 = vpop.permute.xlu1 %51  ;;  %v1135_v18 = vpop.permute.xlu0 %41 }
  0x82   :  { %v91_v30 = vadd.f32 %v90_v21, %v1133_v17  ;;  %v81_v31 = vadd.f32 %v80_v22, %v1135_v18  ;;  %v1055_v21 = vmov 4  }
  0x85   :  { %v1147_v25 = vpop.permute.xlu1 %56  ;;  %v1149_v26 = vpop.permute.xlu0 %46 }
  0x86   :  { %v96_v32 = vadd.f32 %v95_v23, %v1147_v25  ;;  %v86_v33 = vadd.f32 %v85_v24, %v1149_v26  ;;  %v208_v24 = vrot.slane %v204_v5, %v1125_v13 }
  0x88   :  { %vm115_vm1 = vcmp.gt.f32.partialorder %v96_v32, %v91_v30  ;;  %vm112_vm2 = vcmp.gt.f32.partialorder %v86_v33, %v81_v31  ;;  %vm209_vm0 = vcmp.eq.s32.totalorder %v208_v24, 1 }
  0x89   :  { %v1163_v35 = vpop.permute.xlu1 %66  ;;  %v1165_v36 = vpop.permute.xlu0 %61  ;;  %v113_v40 = vsel %vm112_vm2, %v86_v33, %v81_v31  ;;  %v116_v41 = vsel %vm115_vm1, %v96_v32, %v91_v30 }
  0x8a   :  { %v106_v37 = vadd.f32 %v105_v27, %v1163_v35  ;;  %v101_v38 = vadd.f32 %v100_v28, %v1165_v36  ;;  %vm121_vm5 = vcmp.gt.f32.partialorder %v116_v41, %v113_v40  ;;  %v949_v28 = vld [vmem:[%s1477_s0 + $0x8] sm:$0x7f] }
  0x8b   :  { %v122_v48 = vsel %vm121_vm5, %v116_v41, %v113_v40 }
  0x8c   :  { %vm118_vm4 = vcmp.gt.f32.partialorder %v106_v37, %v101_v38 }
  0x8d   :  { %v1171_v43 = vpop.permute.xlu0 %71  ;;  %v119_v45 = vsel %vm118_vm4, %v106_v37, %v101_v38  ;;  %v213_v37 = vld [vmem:[%s1478_s1 + $0x2] sm:$0x1] }
  0x8e   :  { %v111_v44 = vadd.f32 %v110_v39, %v1171_v43  ;;  %vm271_vm1 = vcmp.ne.s32.totalorder %v213_v37, 0 }
  0x90   :  { %vm124_vm6 = vcmp.gt.f32.partialorder %v111_v44, %v119_v45 }
  0x91   :  { %v125_v49 = vsel %vm124_vm6, %v111_v44, %v119_v45 }
  0x92   :  { %vm127_vm7 = vcmp.gt.f32.partialorder %v125_v49, %v122_v48 }
  0x93   :  { %v128_v50 = vsel %vm127_vm7, %v125_v49, %v122_v48 }
  0x94   :  { %v134_v51 = vadd.f32 %v128_v50, %v75_v47 }
  0x96   :  { %v141_v53 = vsel %vm140_vm8, %v134_v51, %v74_v16 }
  0x97   :  { %v148_v54 = vrot.slane %v141_v53, %v1125_v13  ;;  %v153_v55 = vrot.slane %v141_v53, %v1131_v15  ;;  %v158_v56 = vrot.slane %v141_v53, %v1122_v12  ;;  %v163_v57 = vrot.slane %v141_v53, %v1128_v14 }
  0x98   :  { %v168_v58 = vrot.slane %v141_v53, %v1141_v20  ;;  %v173_v59 = vrot.slane %v141_v53, %v1138_v19  ;;  %v178_v60 = vrot.slane %v141_v53, %v1154_v29 }
  0x99   :  { %v149_v61 = vadd.f32 %v148_v54, %v1135_v18  ;;  %v154_v62 = vadd.f32 %v153_v55, %v1149_v26  ;;  %v159_v63 = vadd.f32 %v158_v56, %v1133_v17  ;;  %v164_v0 = vadd.f32 %v163_v57, %v1147_v25 }
  0x9a   :  { %v169_v1 = vadd.f32 %v168_v58, %v1165_v36  ;;  %v174_v2 = vadd.f32 %v173_v59, %v1163_v35  ;;  %v179_v11 = vadd.f32 %v178_v60, %v1171_v43 }
  0x9b   :  { %vm180_vm10 = vcmp.gt.f32.partialorder %v154_v62, %v149_v61  ;;  %vm183_vm11 = vcmp.gt.f32.partialorder %v164_v0, %v159_v63 }
  0x9c   :  { %v181_v6 = vsel %vm180_vm10, %v154_v62, %v149_v61  ;;  %v182_v7 = vsel %vm180_vm10, 1, %v1052_v3  ;;  %v184_v8 = vsel %vm183_vm11, %v164_v0, %v159_v63  ;;  %v185_v10 = vsel %vm183_vm11, 3, %v1054_v9  ;;  %v950_v0 = vld [vmem:[%s1477_s0 + $0x10] sm:$0x7f] }
  0x9d   :  { %vm186_vm12 = vcmp.gt.f32.partialorder %v174_v2, %v169_v1  ;;  %vm189_vm13 = vcmp.gt.f32.partialorder %v184_v8, %v181_v6 }
  0x9e   :  { %v187_v16 = vsel %vm186_vm12, %v174_v2, %v169_v1  ;;  %v188_v22 = vsel %vm186_vm12, 5, %v1055_v21  ;;  %v190_v23 = vsel %vm189_vm13, %v184_v8, %v181_v6  ;;  %v191_v27 = vsel %vm189_vm13, %v185_v10, %v182_v7  ;;  %v282_v8 = vld [vmem:[%s1478_s1 + $0x3] sm:$0x1] }
  0x9f   :  { %vm192_vm14 = vcmp.gt.f32.partialorder %v179_v11, %v187_v16  ;;  %vm340_vm9 = vcmp.ne.s32.totalorder %v282_v8, 0 }
  0xa0   :  { %v193_v30 = vsel %vm192_vm14, %v179_v11, %v187_v16  ;;  %v194_v31 = vsel %vm192_vm14, 6, %v188_v22 }
  0xa1   :  { %vm195_vm15 = vcmp.gt.f32.partialorder %v193_v30, %v190_v23 }
  0xa2   :  { %v196_v32 = vsel %vm195_vm15, %v193_v30, %v190_v23  ;;  %v197_v33 = vsel %vm195_vm15, %v194_v31, %v191_v27 }
  0xa3   :  { %201 = vst [vmem:[#allocation3 + $0x8] sm:$0x7f] %v197_v33  ;;  %v203_v34 = vadd.f32 %v949_v28, %v196_v32 }
  0xa5   :  { %v210_v38 = vsel %vm209_vm0, %v203_v34, %v141_v53  ;;  %v273_v53 = vsel %vm271_vm1, 1, %v1052_v3 }
  0xa6   :  { %v217_v39 = vrot.slane %v210_v38, %v1125_v13  ;;  %v222_v40 = vrot.slane %v210_v38, %v1131_v15  ;;  %v227_v41 = vrot.slane %v210_v38, %v1122_v12  ;;  %v232_v42 = vrot.slane %v210_v38, %v1128_v14 }
  0xa7   :  { %v237_v44 = vrot.slane %v210_v38, %v1141_v20  ;;  %v242_v45 = vrot.slane %v210_v38, %v1138_v19  ;;  %v247_v46 = vrot.slane %v210_v38, %v1154_v29  ;;  %v277_v62 = vrot.slane %v273_v53, %v1125_v13 }
  0xa8   :  { %v218_v47 = vadd.f32 %v217_v39, %v1135_v18  ;;  %v223_v48 = vadd.f32 %v222_v40, %v1149_v26  ;;  %v228_v49 = vadd.f32 %v227_v41, %v1133_v17  ;;  %v233_v50 = vadd.f32 %v232_v42, %v1147_v25 }
  0xa9   :  { %v238_v51 = vadd.f32 %v237_v44, %v1165_v36  ;;  %v243_v52 = vadd.f32 %v242_v45, %v1163_v35  ;;  %v248_v58 = vadd.f32 %v247_v46, %v1171_v43  ;;  %vm278_vm8 = vcmp.eq.s32.totalorder %v277_v62, 1 }
  0xaa   :  { %vm249_vm2 = vcmp.gt.f32.partialorder %v223_v48, %v218_v47  ;;  %vm252_vm3 = vcmp.gt.f32.partialorder %v233_v50, %v228_v49 }
  0xab   :  { %v250_v54 = vsel %vm249_vm2, %v223_v48, %v218_v47  ;;  %v251_v55 = vsel %vm249_vm2, 1, %v1052_v3  ;;  %v253_v56 = vsel %vm252_vm3, %v233_v50, %v228_v49  ;;  %v254_v57 = vsel %vm252_vm3, 3, %v1054_v9  ;;  %v951_v50 = vld [vmem:[%s1477_s0 + $0x18] sm:$0x7f] }
  0xac   :  { %vm255_vm4 = vcmp.gt.f32.partialorder %v243_v52, %v238_v51  ;;  %vm258_vm5 = vcmp.gt.f32.partialorder %v253_v56, %v250_v54 }
  0xad   :  { %v256_v59 = vsel %vm255_vm4, %v243_v52, %v238_v51  ;;  %v257_v60 = vsel %vm255_vm4, 5, %v1055_v21  ;;  %v259_v61 = vsel %vm258_vm5, %v253_v56, %v250_v54  ;;  %v260_v63 = vsel %vm258_vm5, %v254_v57, %v251_v55  ;;  %v351_v56 = vld [vmem:[%s1478_s1 + $0x4] sm:$0x1] }
  0xae   :  { %vm261_vm6 = vcmp.gt.f32.partialorder %v248_v58, %v256_v59  ;;  %vm409_vm1 = vcmp.ne.s32.totalorder %v351_v56, 0 }
  0xaf   :  { %v262_v1 = vsel %vm261_vm6, %v248_v58, %v256_v59  ;;  %v263_v2 = vsel %vm261_vm6, 6, %v257_v60 }
  0xb0   :  { %vm264_vm7 = vcmp.gt.f32.partialorder %v262_v1, %v259_v61 }
  0xb1   :  { %v265_v5 = vsel %vm264_vm7, %v262_v1, %v259_v61  ;;  %v266_v6 = vsel %vm264_vm7, %v263_v2, %v260_v63 }
  0xb2   :  { %270 = vst [vmem:[#allocation3 + $0x10] sm:$0x7f] %v266_v6  ;;  %v272_v7 = vadd.f32 %v950_v0, %v265_v5 }
  0xb4   :  { %v279_v10 = vsel %vm278_vm8, %v272_v7, %v210_v38  ;;  %v342_v38 = vsel %vm340_vm9, 1, %v1052_v3 }
  0xb5   :  { %v286_v11 = vrot.slane %v279_v10, %v1125_v13  ;;  %v291_v16 = vrot.slane %v279_v10, %v1131_v15  ;;  %v296_v22 = vrot.slane %v279_v10, %v1122_v12  ;;  %v301_v23 = vrot.slane %v279_v10, %v1128_v14 }
  0xb6   :  { %v306_v24 = vrot.slane %v279_v10, %v1141_v20  ;;  %v311_v27 = vrot.slane %v279_v10, %v1138_v19  ;;  %v316_v28 = vrot.slane %v279_v10, %v1154_v29  ;;  %v346_v48 = vrot.slane %v342_v38, %v1125_v13 }
  0xb7   :  { %v287_v30 = vadd.f32 %v286_v11, %v1135_v18  ;;  %v292_v31 = vadd.f32 %v291_v16, %v1149_v26  ;;  %v297_v32 = vadd.f32 %v296_v22, %v1133_v17  ;;  %v302_v33 = vadd.f32 %v301_v23, %v1147_v25 }
  0xb8   :  { %v307_v34 = vadd.f32 %v306_v24, %v1165_v36  ;;  %v312_v37 = vadd.f32 %v311_v27, %v1163_v35  ;;  %v317_v44 = vadd.f32 %v316_v28, %v1171_v43  ;;  %vm347_vm0 = vcmp.eq.s32.totalorder %v346_v48, 1 }
  0xb9   :  { %vm318_vm10 = vcmp.gt.f32.partialorder %v292_v31, %v287_v30  ;;  %vm321_vm11 = vcmp.gt.f32.partialorder %v302_v33, %v297_v32 }
  0xba   :  { %v319_v39 = vsel %vm318_vm10, %v292_v31, %v287_v30  ;;  %v320_v40 = vsel %vm318_vm10, 1, %v1052_v3  ;;  %v322_v41 = vsel %vm321_vm11, %v302_v33, %v297_v32  ;;  %v323_v42 = vsel %vm321_vm11, 3, %v1054_v9  ;;  %v952_v33 = vld [vmem:[%s1477_s0 + $0x20] sm:$0x7f] }
  0xbb   :  { %vm324_vm12 = vcmp.gt.f32.partialorder %v312_v37, %v307_v34  ;;  %vm327_vm13 = vcmp.gt.f32.partialorder %v322_v41, %v319_v39 }
  0xbc   :  { %v325_v45 = vsel %vm324_vm12, %v312_v37, %v307_v34  ;;  %v326_v46 = vsel %vm324_vm12, 5, %v1055_v21  ;;  %v328_v47 = vsel %vm327_vm13, %v322_v41, %v319_v39  ;;  %v329_v49 = vsel %vm327_vm13, %v323_v42, %v320_v40  ;;  %v420_v41 = vld [vmem:[%s1478_s1 + $0x5] sm:$0x1] }
  0xbd   :  { %vm330_vm14 = vcmp.gt.f32.partialorder %v317_v44, %v325_v45  ;;  %vm478_vm9 = vcmp.ne.s32.totalorder %v420_v41, 0 }
  0xbe   :  { %v331_v51 = vsel %vm330_vm14, %v317_v44, %v325_v45  ;;  %v332_v52 = vsel %vm330_vm14, 6, %v326_v46 }
  0xbf   :  { %vm333_vm15 = vcmp.gt.f32.partialorder %v331_v51, %v328_v47 }
  0xc0   :  { %v334_v53 = vsel %vm333_vm15, %v331_v51, %v328_v47  ;;  %v335_v54 = vsel %vm333_vm15, %v332_v52, %v329_v49 }
  0xc1   :  { %339 = vst [vmem:[#allocation3 + $0x18] sm:$0x7f] %v335_v54  ;;  %v341_v55 = vadd.f32 %v951_v50, %v334_v53 }
  0xc3   :  { %v348_v57 = vsel %vm347_vm0, %v341_v55, %v279_v10  ;;  %v411_v10 = vsel %vm409_vm1, 1, %v1052_v3 }
  0xc4   :  { %v355_v58 = vrot.slane %v348_v57, %v1125_v13  ;;  %v360_v59 = vrot.slane %v348_v57, %v1131_v15  ;;  %v365_v60 = vrot.slane %v348_v57, %v1122_v12  ;;  %v370_v61 = vrot.slane %v348_v57, %v1128_v14 }
  0xc5   :  { %v375_v62 = vrot.slane %v348_v57, %v1141_v20  ;;  %v380_v63 = vrot.slane %v348_v57, %v1138_v19  ;;  %v385_v0 = vrot.slane %v348_v57, %v1154_v29  ;;  %v415_v31 = vrot.slane %v411_v10, %v1125_v13 }
  0xc6   :  { %v356_v1 = vadd.f32 %v355_v58, %v1135_v18  ;;  %v361_v2 = vadd.f32 %v360_v59, %v1149_v26  ;;  %v366_v5 = vadd.f32 %v365_v60, %v1133_v17  ;;  %v371_v6 = vadd.f32 %v370_v61, %v1147_v25 }
  0xc7   :  { %v376_v7 = vadd.f32 %v375_v62, %v1165_v36  ;;  %v381_v8 = vadd.f32 %v380_v63, %v1163_v35  ;;  %v386_v24 = vadd.f32 %v385_v0, %v1171_v43  ;;  %vm416_vm8 = vcmp.eq.s32.totalorder %v415_v31, 1 }
  0xc8   :  { %vm387_vm2 = vcmp.gt.f32.partialorder %v361_v2, %v356_v1  ;;  %vm390_vm3 = vcmp.gt.f32.partialorder %v371_v6, %v366_v5 }
  0xc9   :  { %v388_v11 = vsel %vm387_vm2, %v361_v2, %v356_v1  ;;  %v389_v16 = vsel %vm387_vm2, 1, %v1052_v3  ;;  %v391_v22 = vsel %vm390_vm3, %v371_v6, %v366_v5  ;;  %v392_v23 = vsel %vm390_vm3, 3, %v1054_v9  ;;  %v953_v6 = vld [vmem:[%s1477_s0 + $0x28] sm:$0x7f] }
  0xca   :  { %vm393_vm4 = vcmp.gt.f32.partialorder %v381_v8, %v376_v7  ;;  %vm396_vm5 = vcmp.gt.f32.partialorder %v391_v22, %v388_v11 }
  0xcb   :  { %v394_v27 = vsel %vm393_vm4, %v381_v8, %v376_v7  ;;  %v395_v28 = vsel %vm393_vm4, 5, %v1055_v21  ;;  %v397_v30 = vsel %vm396_vm5, %v391_v22, %v388_v11  ;;  %v398_v32 = vsel %vm396_vm5, %v392_v23, %v389_v16  ;;  %v489_v22 = vld [vmem:[%s1478_s1 + $0x6] sm:$0x1] }
  0xcc   :  { %vm399_vm6 = vcmp.gt.f32.partialorder %v386_v24, %v394_v27  ;;  %vm547_vm1 = vcmp.ne.s32.totalorder %v489_v22, 0 }
  0xcd   :  { %v400_v34 = vsel %vm399_vm6, %v386_v24, %v394_v27  ;;  %v401_v37 = vsel %vm399_vm6, 6, %v395_v28 }
  0xce   :  { %vm402_vm7 = vcmp.gt.f32.partialorder %v400_v34, %v397_v30 }
  0xcf   :  { %v403_v38 = vsel %vm402_vm7, %v400_v34, %v397_v30  ;;  %v404_v39 = vsel %vm402_vm7, %v401_v37, %v398_v32 }
  0xd0   :  { %408 = vst [vmem:[#allocation3 + $0x20] sm:$0x7f] %v404_v39  ;;  %v410_v40 = vadd.f32 %v952_v33, %v403_v38 }
  0xd2   :  { %v417_v42 = vsel %vm416_vm8, %v410_v40, %v348_v57  ;;  %v480_v57 = vsel %vm478_vm9, 1, %v1052_v3 }
  0xd3   :  { %v424_v44 = vrot.slane %v417_v42, %v1125_v13  ;;  %v429_v45 = vrot.slane %v417_v42, %v1131_v15  ;;  %v434_v46 = vrot.slane %v417_v42, %v1122_v12  ;;  %v439_v47 = vrot.slane %v417_v42, %v1128_v14 }
  0xd4   :  { %v444_v48 = vrot.slane %v417_v42, %v1141_v20  ;;  %v449_v49 = vrot.slane %v417_v42, %v1138_v19  ;;  %v454_v50 = vrot.slane %v417_v42, %v1154_v29  ;;  %v484_v2 = vrot.slane %v480_v57, %v1125_v13 }
  0xd5   :  { %v425_v51 = vadd.f32 %v424_v44, %v1135_v18  ;;  %v430_v52 = vadd.f32 %v429_v45, %v1149_v26  ;;  %v435_v53 = vadd.f32 %v434_v46, %v1133_v17  ;;  %v440_v54 = vadd.f32 %v439_v47, %v1147_v25 }
  0xd6   :  { %v445_v55 = vadd.f32 %v444_v48, %v1165_v36  ;;  %v450_v56 = vadd.f32 %v449_v49, %v1163_v35  ;;  %v455_v62 = vadd.f32 %v454_v50, %v1171_v43  ;;  %vm485_vm0 = vcmp.eq.s32.totalorder %v484_v2, 1 }
  0xd7   :  { %vm456_vm10 = vcmp.gt.f32.partialorder %v430_v52, %v425_v51  ;;  %vm459_vm11 = vcmp.gt.f32.partialorder %v440_v54, %v435_v53 }
  0xd8   :  { %v457_v58 = vsel %vm456_vm10, %v430_v52, %v425_v51  ;;  %v458_v59 = vsel %vm456_vm10, 1, %v1052_v3  ;;  %v460_v60 = vsel %vm459_vm11, %v440_v54, %v435_v53  ;;  %v461_v61 = vsel %vm459_vm11, 3, %v1054_v9  ;;  %v954_v54 = vld [vmem:[%s1477_s0 + $0x30] sm:$0x7f] }
  0xd9   :  { %vm462_vm12 = vcmp.gt.f32.partialorder %v450_v56, %v445_v55  ;;  %vm465_vm13 = vcmp.gt.f32.partialorder %v460_v60, %v457_v58 }
  0xda   :  { %v463_v63 = vsel %vm462_vm12, %v450_v56, %v445_v55  ;;  %v464_v0 = vsel %vm462_vm12, 5, %v1055_v21  ;;  %v466_v1 = vsel %vm465_vm13, %v460_v60, %v457_v58  ;;  %v467_v5 = vsel %vm465_vm13, %v461_v61, %v458_v59  ;;  %v558_v60 = vld [vmem:[%s1478_s1 + $0x7] sm:$0x1] }
  0xdb   :  { %vm468_vm14 = vcmp.gt.f32.partialorder %v455_v62, %v463_v63  ;;  %vm616_vm9 = vcmp.ne.s32.totalorder %v558_v60, 0 }
  0xdc   :  { %v469_v7 = vsel %vm468_vm14, %v455_v62, %v463_v63  ;;  %v470_v8 = vsel %vm468_vm14, 6, %v464_v0 }
  0xdd   :  { %vm471_vm15 = vcmp.gt.f32.partialorder %v469_v7, %v466_v1 }
  0xde   :  { %v472_v10 = vsel %vm471_vm15, %v469_v7, %v466_v1  ;;  %v473_v11 = vsel %vm471_vm15, %v470_v8, %v467_v5 }
  0xdf   :  { %477 = vst [vmem:[#allocation3 + $0x28] sm:$0x7f] %v473_v11  ;;  %v479_v16 = vadd.f32 %v953_v6, %v472_v10 }
  0xe1   :  { %v486_v23 = vsel %vm485_vm0, %v479_v16, %v417_v42  ;;  %v549_v42 = vsel %vm547_vm1, 1, %v1052_v3 }
  0xe2   :  { %v493_v24 = vrot.slane %v486_v23, %v1125_v13  ;;  %v498_v27 = vrot.slane %v486_v23, %v1131_v15  ;;  %v503_v28 = vrot.slane %v486_v23, %v1122_v12  ;;  %v508_v30 = vrot.slane %v486_v23, %v1128_v14 }
  0xe3   :  { %v513_v31 = vrot.slane %v486_v23, %v1141_v20  ;;  %v518_v32 = vrot.slane %v486_v23, %v1138_v19  ;;  %v523_v33 = vrot.slane %v486_v23, %v1154_v29  ;;  %v553_v52 = vrot.slane %v549_v42, %v1125_v13 }
  0xe4   :  { %v494_v34 = vadd.f32 %v493_v24, %v1135_v18  ;;  %v499_v37 = vadd.f32 %v498_v27, %v1149_v26  ;;  %v504_v38 = vadd.f32 %v503_v28, %v1133_v17  ;;  %v509_v39 = vadd.f32 %v508_v30, %v1147_v25 }
  0xe5   :  { %v514_v40 = vadd.f32 %v513_v31, %v1165_v36  ;;  %v519_v41 = vadd.f32 %v518_v32, %v1163_v35  ;;  %v524_v48 = vadd.f32 %v523_v33, %v1171_v43  ;;  %vm554_vm8 = vcmp.eq.s32.totalorder %v553_v52, 1  ;;  %v955_v32 = vld [vmem:[%s1477_s0 + $0x38] sm:$0x7f]  ;;  %s1057_s0 = smov [#allocation6]  }
  0xe6   :  { %vm525_vm2 = vcmp.gt.f32.partialorder %v499_v37, %v494_v34  ;;  %vm528_vm3 = vcmp.gt.f32.partialorder %v509_v39, %v504_v38  ;;  %s917_s16 = sshll.u32 %s1057_s0, 4  ;;  %s918_s16 = int_to_ptr.vmem [resolvable:$true] %s917_s16 }
  0xe7   :  { %v526_v44 = vsel %vm525_vm2, %v499_v37, %v494_v34  ;;  %v527_v45 = vsel %vm525_vm2, 1, %v1052_v3  ;;  %v529_v46 = vsel %vm528_vm3, %v509_v39, %v504_v38  ;;  %v530_v47 = vsel %vm528_vm3, 3, %v1054_v9  ;;  %s982_s17 = scalar_lea.vmem %s918_s16, 16  ;;  %s986_s18 = scalar_lea.vmem %s918_s16, 32 }
  0xe8   :  { %vm531_vm4 = vcmp.gt.f32.partialorder %v519_v41, %v514_v40  ;;  %vm534_vm5 = vcmp.gt.f32.partialorder %v529_v46, %v526_v44  ;;  %p983_p0 = scmp.ne.s32.totalorder %s918_s16, %s982_s17  ;;  %p987_p1 = scmp.lt.s32.totalorder %s918_s16, %s918_s16 }
  0xe9   :  { %v532_v49 = vsel %vm531_vm4, %v519_v41, %v514_v40  ;;  %v533_v50 = vsel %vm531_vm4, 5, %v1055_v21  ;;  %v535_v51 = vsel %vm534_vm5, %v529_v46, %v526_v44  ;;  %v536_v53 = vsel %vm534_vm5, %v530_v47, %v527_v45  ;;  %p988_p2 = scmp.lt.s32.totalorder %s986_s18, %s982_s17 }
  0xea   :  { %vm537_vm6 = vcmp.gt.f32.partialorder %v524_v48, %v532_v49  ;;  %v629_v40 = vrot.slane %v1135_v18, 6  ;;  %v635_v41 = vrot.slane %v1133_v17, 4  ;;  %v641_v44 = vrot.slane %v1165_v36, 2 }
  0xeb   :  { %v538_v55 = vsel %vm537_vm6, %v524_v48, %v532_v49  ;;  %v539_v56 = vsel %vm537_vm6, 6, %v533_v50  ;;  %v632_v46 = vrot.slane %v1149_v26, 5  ;;  %v638_v48 = vrot.slane %v1147_v25, 3  ;;  %p989_p3 = por %p988_p2, %p987_p1 }
  0xec   :  { %vm540_vm7 = vcmp.gt.f32.partialorder %v538_v55, %v535_v51  ;;  %v644_v50 = vrot.slane %v1163_v35, 1 }
  0xed   :  { %v541_v57 = vsel %vm540_vm7, %v538_v55, %v535_v51  ;;  %v542_v58 = vsel %vm540_vm7, %v539_v56, %v536_v53  ;;  %vm766_vm7 = vcmask 1046528   ;;  %p990_p4 = pnand %p989_p3, %p983_p0 }
  0xee   :  { %546 = vst [vmem:[#allocation3 + $0x30] sm:$0x7f] %v542_v58  ;;  %v548_v59 = vadd.f32 %v954_v54, %v541_v57 }
  0xf0   :  { %v555_v61 = vsel %vm554_vm8, %v548_v59, %v486_v23 }
  0xf1   :  { %v562_v62 = vrot.slane %v555_v61, %v1125_v13  ;;  %v567_v63 = vrot.slane %v555_v61, %v1131_v15  ;;  %v572_v0 = vrot.slane %v555_v61, %v1122_v12  ;;  %v577_v1 = vrot.slane %v555_v61, %v1128_v14 }
  0xf2   :  { %v582_v2 = vrot.slane %v555_v61, %v1141_v20  ;;  %v587_v5 = vrot.slane %v555_v61, %v1138_v19  ;;  %v592_v6 = vrot.slane %v555_v61, %v1154_v29  ;;  %v618_v14 = vsel %vm616_vm9, 1, %v1052_v3 }
  0xf3   :  { %v563_v7 = vadd.f32 %v562_v62, %v1135_v18  ;;  %v568_v8 = vadd.f32 %v567_v63, %v1149_v26  ;;  %v573_v10 = vadd.f32 %v572_v0, %v1133_v17  ;;  %v578_v11 = vadd.f32 %v577_v1, %v1147_v25 }
  0xf4   :  { %v583_v15 = vadd.f32 %v582_v2, %v1165_v36  ;;  %v588_v12 = vadd.f32 %v587_v5, %v1163_v35  ;;  %v593_v23 = vadd.f32 %v592_v6, %v1171_v43  ;;  %v622_v30 = vrot.slane %v618_v14, %v1125_v13 }
  0xf5   :  { %vm594_vm10 = vcmp.gt.f32.partialorder %v568_v8, %v563_v7  ;;  %vm597_vm11 = vcmp.gt.f32.partialorder %v578_v11, %v573_v10  ;;  %v1056_v35 = vmov 1966171168  }
  0xf6   :  { %v595_v19 = vsel %vm594_vm10, %v568_v8, %v563_v7  ;;  %v596_v20 = vsel %vm594_vm10, 1, %v1052_v3  ;;  %v598_v16 = vsel %vm597_vm11, %v578_v11, %v573_v10  ;;  %v599_v22 = vsel %vm597_vm11, 3, %v1054_v9 }
  0xf7   :  { %vm600_vm12 = vcmp.gt.f32.partialorder %v588_v12, %v583_v15  ;;  %vm603_vm13 = vcmp.gt.f32.partialorder %v598_v16, %v595_v19  ;;  %vm623_vm0 = vcmp.eq.s32.totalorder %v622_v30, 1  ;;  %v777_v54 = vunpack.c.l.s4 %v1056_v35 }
  0xf8   :  { %v601_v24 = vsel %vm600_vm12, %v588_v12, %v583_v15  ;;  %v602_v27 = vsel %vm600_vm12, 5, %v1055_v21  ;;  %v604_v28 = vsel %vm603_vm13, %v598_v16, %v595_v19  ;;  %v605_v31 = vsel %vm603_vm13, %v599_v22, %v596_v20 }
  0xf9   :  { %vm606_vm14 = vcmp.gt.f32.partialorder %v593_v23, %v601_v24  ;;  %v778_v1 = vunpack.c.0.s8 %v777_v54 }
  0xfa   :  { %v607_v33 = vsel %vm606_vm14, %v593_v23, %v601_v24  ;;  %v608_v34 = vsel %vm606_vm14, 6, %v602_v27 }
  0xfb   :  { %vm609_vm15 = vcmp.gt.f32.partialorder %v607_v33, %v604_v28  ;;  %v781_v7 = vsub.s32 %v778_v1, %v1103_v4 }
  0xfc   :  { %v610_v37 = vsel %vm609_vm15, %v607_v33, %v604_v28  ;;  %v611_v38 = vsel %vm609_vm15, %v608_v34, %v605_v31 }
  0xfd   :  { %615 = vst [vmem:[#allocation3 + $0x38] sm:$0x7f] %v611_v38  ;;  %v617_v39 = vadd.f32 %v955_v32, %v610_v37 }
  0xff   :  { %v624_v42 = vsel %vm623_vm0, %v617_v39, %v555_v61 }
 0x100   :  { %625 = vst [vmem:[#allocation2] sm:$0x7f] %v624_v42  ;;  %v1356_v45 = vadd.f32 %v629_v40, %v624_v42  ;;  %v1359_v47 = vadd.f32 %v635_v41, %v624_v42  ;;  %v1362_v49 = vadd.f32 %v641_v44, %v624_v42  ;;  %v1365_v51 = vadd.f32 %v632_v46, %v624_v42 }
 0x101   :  { %v1367_v18 = vadd.f32 %v638_v48, %v624_v42  ;;  %v1372_v53 = vadd.f32 %v644_v50, %v624_v42  ;;  %v1380_v57 = vadd.f32 %v624_v42, %v1171_v43 }
 0x102   :  { %v649_v17 = vrot.slane %v1356_v45, 7  ;;  %v655_v36 = vrot.slane %v1359_v47, 7  ;;  %v661_v52 = vrot.slane %v1362_v49, 7 }
 0x104   :  { %vm651_vm1 = vcmp.gt.f32.partialorder %v1365_v51, %v649_v17  ;;  %vm657_vm2 = vcmp.gt.f32.partialorder %v1367_v18, %v655_v36  ;;  %vm663_vm3 = vcmp.gt.f32.partialorder %v1372_v53, %v661_v52 }
 0x105   :  { %v652_v25 = vsel %vm651_vm1, %v1365_v51, %v649_v17  ;;  %v653_v26 = vsel %vm651_vm1, 1, %v1052_v3  ;;  %v658_v58 = vsel %vm657_vm2, %v1367_v18, %v655_v36  ;;  %v664_v59 = vsel %vm663_vm3, %v1372_v53, %v661_v52 }
 0x106   :  { %v667_v55 = vrot.slane %v652_v25, 6  ;;  %v671_v56 = vrot.slane %v653_v26, 6  ;;  %v665_v60 = vsel %vm663_vm3, 5, %v1055_v21  ;;  %v659_v61 = vsel %vm657_vm2, 3, %v1054_v9 }
 0x107   :  { %v674_v62 = vrot.slane %v664_v59, 7  ;;  %v678_v3 = vrot.slane %v665_v60, 7 }
 0x108   :  { %vm669_vm4 = vcmp.gt.f32.partialorder %v658_v58, %v667_v55 }
 0x109   :  { %v670_v63 = vsel %vm669_vm4, %v658_v58, %v667_v55  ;;  %v672_v0 = vsel %vm669_vm4, %v659_v61, %v671_v56  ;;  %vm676_vm5 = vcmp.gt.f32.partialorder %v1380_v57, %v674_v62 }
 0x10a   :  { %v681_v43 = vrot.slane %v670_v63, 5  ;;  %v685_v2 = vrot.slane %v672_v0, 5  ;;  %v677_v5 = vsel %vm676_vm5, %v1380_v57, %v674_v62  ;;  %v679_v6 = vsel %vm676_vm5, 6, %v678_v3 }
 0x10c   :  { %vm683_vm6 = vcmp.gt.f32.partialorder %v677_v5, %v681_v43 }
 0x10d   :  { %v1388_v21 = vsel %vm683_vm6, %v677_v5, %v681_v43  ;;  %v686_v9 = vsel %vm683_vm6, %v679_v6, %v685_v2 }
 0x10e   :  { %687 = vst [vmem:[#allocation6 - $0x6] sm:$0x40] %v686_v9  ;;  %v689_v8 = vrot.slane %v1388_v21, 6  ;;  %v704_v10 = vrot.slane %v1388_v21, 4  ;;  %v722_v11 = vrot.slane %v1388_v21, 2  ;;  %v763_v15 = vrot.slane %v686_v9, %v1154_v29 }
 0x10f   :  { %757 = vst [vmem:[#allocation4 + $0x1] sm:$0x40] %v686_v9 }
 0x110   :  { %993 = shalt.err (!%p990_p4)
}
 0x111   :  { %s994_s21 = scalar_lea.hbm %s1482_s5, 16 }
 0x112   :  { %p995_p5 = scmp.ne.s32.totalorder %s1482_s5, %s994_s21  ;;  %p998_p6 = scmp.lt.u32.totalorder %s994_s21, %s1482_s5 }
 0x114   :  { %p1000_p7 = pnand %p998_p6, %p995_p5 }
 0x116   :  { %1003 = shalt.err (!%p1000_p7)
}
 0x117   :  { %920 = dma.vmem_to_hbm [thread:$0]  %s918_s16, 16, %s1482_s5, [#allocation7]   ;;  %v695_v29 = vrot.slane %v1388_v21, 5  ;;  %v713_v12 = vrot.slane %v1388_v21, 3  ;;  %v731_v14 = vrot.slane %v1388_v21, 1  ;;  %v691_v19 = vsub.f32 %v1356_v45, %v689_v8 }
 0x118   :  { %v706_v20 = vsub.f32 %v1359_v47, %v704_v10  ;;  %v759_v16 = vld [vmem:[#allocation3 + $0x38] sm:$0x7f]  ;;  %vm764_vm8 = vcmp.eq.s32.totalorder %v1103_v4, %v763_v15  ;;  %v775_v22 = vcombine.high %v686_v9, %v686_v9  ;;  %v724_v23 = vsub.f32 %v1362_v49, %v722_v11  ;;  %v794_v54 = vld [vmem:[#allocation3 + $0x30] sm:$0x7f] }
 0x119   :  { %v765_v24 = vsel %vm764_vm8, %v759_v16, 0  ;;  %v697_v27 = vsub.f32 %v1365_v51, %v695_v29  ;;  %v715_v28 = vsub.f32 %v1367_v18, %v713_v12  ;;  %v692_v30 = vmul.f32 1.442695, %v691_v19  ;;  %v1423_v46 = vld [vmem:[%s1480_s3] sm:$0x1]  ;;  %s1058_s3 = smov [#allocation8]  }
 0x11a   :  { %v707_v31 = vmul.f32 1.442695, %v706_v20  ;;  %v767_v32 = vsel %vm766_vm7, %v765_v24, 0  ;;  %v733_v38 = vsub.f32 %v1372_v53, %v731_v14  ;;  %v782_v39 = vrot.slane %v775_v22, %v781_v7  ;;  %v812_v14 = vld [vmem:[#allocation3 + $0x28] sm:$0x7f]  ;;  %s927_s29 = sshll.u32 %s1058_s3, 4  ;;  %s928_s29 = int_to_ptr.vmem [resolvable:$true] %s927_s29 }
 0x11b   :  { %v768_v33 = vrot.slane %v767_v32, 4  ;;  %v698_v34 = vmul.f32 1.442695, %v697_v27  ;;  %v716_v37 = vmul.f32 1.442695, %v715_v28  ;;  %966 = vpow2.f32 %v692_v30  ;;  %s1004_s30 = scalar_lea.vmem %s928_s29, 16  ;;  %p1009_p9 = scmp.lt.s32.totalorder %s928_s29, %s928_s29 }
 0x11c   :  { %v725_v41 = vmul.f32 1.442695, %v724_v23  ;;  %v740_v42 = vsub.f32 %v1380_v57, %v1388_v21  ;;  %v734_v45 = vmul.f32 1.442695, %v733_v38  ;;  %v789_v48 = vrot.slane %v782_v39, %v781_v7  ;;  %p1005_p8 = scmp.ne.s32.totalorder %s928_s29, %s1004_s30  ;;  %s1008_s7 = scalar_lea.vmem %s928_s29, 32 }
 0x11d   :  { %v769_v40 = vadd.s32 %v768_v33, %v767_v32  ;;  %968 = vpow2.f32 %v698_v34  ;;  %vm774_vm9 = vcmp.gt.s32.totalorder %v1423_v46, 7  ;;  %vm808_vm11 = vcmp.gt.s32.totalorder %v1423_v46, 6  ;;  %p1010_p10 = scmp.lt.s32.totalorder %s1008_s7, %s1004_s30 }
 0x11e   :  { %970 = vpow2.f32 %v707_v31  ;;  %v741_v49 = vmul.f32 1.442695, %v740_v42  ;;  %v790_v18 = vcombine.high %v789_v48, %v789_v48  ;;  %vm826_vm13 = vcmp.gt.s32.totalorder %v1423_v46, 5 }
 0x11f   :  { %v770_v44 = vrot.slane %v769_v40, 2  ;;  %972 = vpow2.f32 %v716_v37  ;;  %p1011_p11 = por %p1010_p10, %p1009_p9 }
 0x120   :  { %974 = vpow2.f32 %v725_v41 }
 0x121   :  { %v771_v47 = vadd.s32 %v770_v44, %v769_v40  ;;  %976 = vpow2.f32 %v734_v45  ;;  %p1012_p12 = pnand %p1011_p11, %p1005_p8 }
 0x122   :  { %978 = vpow2.f32 %v741_v49 }
 0x123   :  { %v772_v50 = vrot.slane %v771_v47, 1 }
 0x125   :  { %v773_v51 = vadd.s32 %v772_v50, %v771_v47  ;;  %v967_v17 = vpop.eup %966 }
 0x127   :  { %v969_v36 = vpop.eup %968  ;;  %v791_v52 = vsel %vm774_vm9, %v773_v51, %v790_v18 }
 0x128   :  { %v971_v53 = vpop.eup %970  ;;  %v798_v25 = vrot.slane %v791_v52, %v1125_v13  ;;  %792 = vst [vmem:[#allocation4 + $0x6] sm:$0x1] %v791_v52  ;;  %v701_v26 = vrot.slane %v969_v36, 1 }
 0x129   :  { %v973_v35 = vpop.eup %972  ;;  %v710_v56 = vrot.slane %v971_v53, 2 }
 0x12a   :  { %vm799_vm10 = vcmp.eq.s32.totalorder %v1103_v4, %v798_v25  ;;  %v703_v55 = vadd.f32 %v967_v17, %v701_v26  ;;  %v975_v57 = vpop.eup %974  ;;  %v719_v61 = vrot.slane %v973_v35, 3 }
 0x12b   :  { %v800_v58 = vsel %vm799_vm10, %v794_v54, 0  ;;  %v977_v62 = vpop.eup %976  ;;  %v728_v0 = vrot.slane %v975_v57, 4 }
 0x12c   :  { %v801_v59 = vsel %vm766_vm7, %v800_v58, 0  ;;  %v712_v60 = vadd.f32 %v710_v56, %v703_v55  ;;  %v979_v1 = vpop.eup %978  ;;  %v737_v5 = vrot.slane %v977_v62, 5 }
 0x12d   :  { %v802_v3 = vrot.slane %v801_v59, 4  ;;  %v744_v7 = vrot.slane %v979_v1, 6 }
 0x12e   :  { %v721_v63 = vadd.f32 %v719_v61, %v712_v60 }
 0x12f   :  { %v803_v43 = vadd.s32 %v802_v3, %v801_v59 }
 0x130   :  { %v730_v2 = vadd.f32 %v728_v0, %v721_v63 }
 0x131   :  { %v804_v6 = vrot.slane %v803_v43, 2 }
 0x132   :  { %v739_v9 = vadd.f32 %v737_v5, %v730_v2 }
 0x133   :  { %v805_v8 = vadd.s32 %v804_v6, %v803_v43 }
 0x134   :  { %v746_v10 = vadd.f32 %v744_v7, %v739_v9 }
 0x135   :  { %v806_v11 = vrot.slane %v805_v8, 1 }
 0x136   :  { %980 = vlog2.f32 %v746_v10 }
 0x137   :  { %v807_v15 = vadd.s32 %v806_v11, %v805_v8 }
 0x139   :  { %v809_v29 = vsel %vm808_vm11, %v807_v15, %v791_v52 }
 0x13a   :  { %v816_v12 = vrot.slane %v809_v29, %v1125_v13  ;;  %810 = vst [vmem:[#allocation4 + $0x5] sm:$0x1] %v809_v29 }
 0x13c   :  { %vm817_vm12 = vcmp.eq.s32.totalorder %v1103_v4, %v816_v12 }
 0x13d   :  { %v818_v19 = vsel %vm817_vm12, %v812_v14, 0 }
 0x13e   :  { %v819_v20 = vsel %vm766_vm7, %v818_v19, 0 }
 0x13f   :  { %v820_v16 = vrot.slane %v819_v20, 4 }
 0x140   :  { %v981_v22 = vpop.eup %980 }
 0x141   :  { %v821_v23 = vadd.s32 %v820_v16, %v819_v20  ;;  %v748_v24 = vmul.f32 0.6931472, %v981_v22 }
 0x143   :  { %v822_v27 = vrot.slane %v821_v23, 2  ;;  %v750_v28 = vrot.slane %v748_v24, 2 }
 0x145   :  { %v823_v30 = vadd.s32 %v822_v27, %v821_v23  ;;  %v752_v31 = vadd.f32 %v750_v28, %v1388_v21 }
 0x147   :  { %v824_v32 = vrot.slane %v823_v30, 1  ;;  %753 = vst [vmem:[#allocation8 - $0x6] sm:$0x40] %v752_v31 }
 0x148   :  { %1015 = shalt.err (!%p1012_p12)
}
 0x149   :  { %s1016_s10 = scalar_lea.hbm %s1483_s6, 16 }
 0x14a   :  { %p1017_p13 = scmp.ne.s32.totalorder %s1483_s6, %s1016_s10  ;;  %p1020_p0 = scmp.lt.u32.totalorder %s1016_s10, %s1483_s6 }
 0x14c   :  { %p1022_p1 = pnand %p1020_p0, %p1017_p13 }
 0x14e   :  { %1025 = shalt.err (!%p1022_p1)
}
 0x14f   :  { %930 = dma.vmem_to_hbm [thread:$0]  %s928_s29, 16, %s1483_s6, [#allocation7]   ;;  %v825_v21 = vadd.s32 %v824_v32, %v823_v30  ;;  %v830_v37 = vld [vmem:[#allocation3 + $0x20] sm:$0x7f]  ;;  %vm844_vm15 = vcmp.gt.s32.totalorder %v1423_v46, 4  ;;  %vm862_vm1 = vcmp.gt.s32.totalorder %v1423_v46, 3 }
 0x150   :  { %v848_v50 = vld [vmem:[#allocation3 + $0x18] sm:$0x7f]  ;;  %v866_v55 = vld [vmem:[#allocation3 + $0x10] sm:$0x7f]  ;;  %vm880_vm3 = vcmp.gt.s32.totalorder %v1423_v46, 2  ;;  %s1059_s6 = smov [#allocation4]  }
 0x151   :  { %v827_v33 = vsel %vm826_vm13, %v825_v21, %v809_v29  ;;  %v884_v1 = vld [vmem:[#allocation3 + $0x8] sm:$0x7f]  ;;  %s907_s15 = sshll.u32 %s1059_s6, 4  ;;  %vm898_vm5 = vcmp.gt.s32.totalorder %v1423_v46, 1  ;;  %s908_s15 = int_to_ptr.vmem [resolvable:$true] %s907_s15 }
 0x152   :  { %828 = vst [vmem:[#allocation4 + $0x4] sm:$0x1] %v827_v33  ;;  %v834_v34 = vrot.slane %v827_v33, %v1125_v13  ;;  %s1026_s0 = scalar_lea.vmem %s908_s15, 128  ;;  %p1031_p3 = scmp.lt.s32.totalorder %s908_s15, %s908_s15 }
 0x153   :  { %p1027_p2 = scmp.ne.s32.totalorder %s908_s15, %s1026_s0  ;;  %p1032_p4 = scmp.lt.s32.totalorder %s1026_s0, %s1026_s0 }
 0x154   :  { %vm835_vm14 = vcmp.eq.s32.totalorder %v1103_v4, %v834_v34 }
 0x155   :  { %v836_v38 = vsel %vm835_vm14, %v830_v37, 0  ;;  %p1033_p5 = por %p1032_p4, %p1031_p3 }
 0x156   :  { %v837_v39 = vsel %vm766_vm7, %v836_v38, 0 }
 0x157   :  { %v838_v40 = vrot.slane %v837_v39, 4  ;;  %p1034_p6 = pnand %p1033_p5, %p1027_p2 }
 0x159   :  { %v839_v41 = vadd.s32 %v838_v40, %v837_v39 }
 0x15b   :  { %v840_v42 = vrot.slane %v839_v41, 2 }
 0x15d   :  { %v841_v44 = vadd.s32 %v840_v42, %v839_v41 }
 0x15f   :  { %v842_v45 = vrot.slane %v841_v44, 1 }
 0x161   :  { %v843_v47 = vadd.s32 %v842_v45, %v841_v44 }
 0x163   :  { %v845_v48 = vsel %vm844_vm15, %v843_v47, %v827_v33 }
 0x164   :  { %846 = vst [vmem:[#allocation4 + $0x3] sm:$0x1] %v845_v48  ;;  %v852_v49 = vrot.slane %v845_v48, %v1125_v13 }
 0x166   :  { %vm853_vm0 = vcmp.eq.s32.totalorder %v1103_v4, %v852_v49 }
 0x167   :  { %v854_v51 = vsel %vm853_vm0, %v848_v50, 0 }
 0x168   :  { %v855_v18 = vsel %vm766_vm7, %v854_v51, 0 }
 0x169   :  { %v856_v17 = vrot.slane %v855_v18, 4 }
 0x16b   :  { %v857_v36 = vadd.s32 %v856_v17, %v855_v18 }
 0x16d   :  { %v858_v52 = vrot.slane %v857_v36, 2 }
 0x16f   :  { %v859_v53 = vadd.s32 %v858_v52, %v857_v36 }
 0x171   :  { %v860_v25 = vrot.slane %v859_v53, 1 }
 0x173   :  { %v861_v26 = vadd.s32 %v860_v25, %v859_v53 }
 0x175   :  { %v863_v35 = vsel %vm862_vm1, %v861_v26, %v845_v48 }
 0x176   :  { %864 = vst [vmem:[#allocation4 + $0x2] sm:$0x1] %v863_v35  ;;  %v870_v54 = vrot.slane %v863_v35, %v1125_v13 }
 0x178   :  { %vm871_vm2 = vcmp.eq.s32.totalorder %v1103_v4, %v870_v54 }
 0x179   :  { %v872_v56 = vsel %vm871_vm2, %v866_v55, 0 }
 0x17a   :  { %v873_v57 = vsel %vm766_vm7, %v872_v56, 0 }
 0x17b   :  { %v874_v58 = vrot.slane %v873_v57, 4 }
 0x17d   :  { %v875_v59 = vadd.s32 %v874_v58, %v873_v57 }
 0x17f   :  { %v876_v60 = vrot.slane %v875_v59, 2 }
 0x181   :  { %v877_v61 = vadd.s32 %v876_v60, %v875_v59 }
 0x183   :  { %v878_v62 = vrot.slane %v877_v61, 1 }
 0x185   :  { %v879_v3 = vadd.s32 %v878_v62, %v877_v61 }
 0x187   :  { %v881_v63 = vsel %vm880_vm3, %v879_v3, %v863_v35 }
 0x188   :  { %882 = vst [vmem:[#allocation4 + $0x1] sm:$0x1] %v881_v63  ;;  %v888_v0 = vrot.slane %v881_v63, %v1125_v13 }
 0x18a   :  { %vm889_vm4 = vcmp.eq.s32.totalorder %v1103_v4, %v888_v0 }
 0x18b   :  { %v890_v43 = vsel %vm889_vm4, %v884_v1, 0 }
 0x18c   :  { %v891_v2 = vsel %vm766_vm7, %v890_v43, 0 }
 0x18d   :  { %v892_v5 = vrot.slane %v891_v2, 4 }
 0x18f   :  { %v893_v6 = vadd.s32 %v892_v5, %v891_v2 }
 0x191   :  { %v894_v9 = vrot.slane %v893_v6, 2 }
 0x193   :  { %v895_v7 = vadd.s32 %v894_v9, %v893_v6 }
 0x195   :  { %v896_v8 = vrot.slane %v895_v7, 1 }
 0x197   :  { %v897_v10 = vadd.s32 %v896_v8, %v895_v7 }
 0x199   :  { %v899_v11 = vsel %vm898_vm5, %v897_v10, %v881_v63 }
 0x19a   :  { %900 = vst [vmem:[#allocation4] sm:$0x1] %v899_v11 }
 0x19b   :  { %1037 = shalt.err (!%p1034_p6)
}
 0x19c   :  { %s1038_s18 = scalar_lea.hbm %s1481_s4, 128 }
 0x19d   :  { %p1039_p7 = scmp.ne.s32.totalorder %s1481_s4, %s1038_s18  ;;  %p1042_p8 = scmp.lt.u32.totalorder %s1038_s18, %s1481_s4 }
 0x19f   :  { %p1044_p9 = pnand %p1042_p8, %p1039_p7 }
 0x1a1   :  { %1047 = shalt.err (!%p1044_p9)
}
 0x1a2   :  { %910 = dma.vmem_to_hbm [thread:$0]  %s908_s15, 128, %s1481_s4, [#allocation5]  }
 0x1a3   :  { %1048 = dma.done.wait [#allocation5], 128  }
 0x1a4   :  { %1049 = vsyncadd [#allocation5], 4294967168 }
 0x1a5   :  { %1050 = dma.done.wait [#allocation7], 32  }
 0x1a6   :  { %1051 = vsyncadd [#allocation7], 4294967264 }
 0x1a7   :  { %940 = vsyncpa [#allocation5], 1 }
 0x1a8   :  { %941 = vsyncpa [#allocation7], 1 }

</bundles_post_ra>
